<compile_context>
chip_gen: v5e
topology: v5e:2x2
jax: 0.10.0
libtpu: 0.0.40
codegen_flags: <defaults>
</compile_context>

<pallas_src>
import jax
import jax.numpy as jnp
from jax.experimental import pallas as pl
from jax.experimental.pallas import tpu as pltpu

_LANE = 128


def _make_kernel(specs, S, TS, num_s_tiles, needs_mask):
    """specs: list of (M_l, C_l).  Kernel refs: parts..., out, acc_parts..."""
    n_parts = len(specs)
    n_chunks = TS // _LANE          # TS is always a multiple of 128

    def _accum_full(part_refs, acc_refs):
        # Hot loop: pure lane-aligned vld + vadd; one VMEM accumulate per part.
        for i in range(n_parts):
            ref = part_refs[i]
            part_sum = None
            for k in range(n_chunks):
                chunk = ref[:, :, k * _LANE:(k + 1) * _LANE].astype(jnp.float32)
                part_sum = chunk if part_sum is None else part_sum + chunk
            acc_refs[i][...] += part_sum

    def _accum_tail(part_refs, acc_refs):
        # Last (ragged) spatial tile.  Chunk boundaries are static, so only
        # the straddling chunk pays a select and fully-OOB chunks are skipped.
        tail_start = (num_s_tiles - 1) * TS
        lane = jax.lax.broadcasted_iota(jnp.int32, (1, 1, _LANE), 2)
        for i in range(n_parts):
            ref = part_refs[i]
            part_sum = None
            for k in range(n_chunks):
                start = tail_start + k * _LANE
                if start >= S:
                    break           # chunk fully out of bounds: skip
                chunk = ref[:, :, k * _LANE:(k + 1) * _LANE].astype(jnp.float32)
                if start + _LANE > S:
                    # Select (NOT multiply-by-mask): OOB lanes may hold
                    # garbage/NaN that must not propagate.
                    chunk = jnp.where(lane < (S - start), chunk, 0.0)
                part_sum = chunk if part_sum is None else part_sum + chunk
            acc_refs[i][...] += part_sum

    def kernel(*refs):
        part_refs = refs[:n_parts]
        out_ref = refs[n_parts]
        acc_refs = refs[n_parts + 1:]

        s = pl.program_id(1)
        last = num_s_tiles - 1

        @pl.when(s == 0)
        def _zero():
            for acc in acc_refs:
                acc[...] = jnp.zeros_like(acc)

        if needs_mask:
            if num_s_tiles > 1:
                @pl.when(s != last)
                def _full_step():
                    _accum_full(part_refs, acc_refs)

            @pl.when(s == last)
            def _tail_step():
                _accum_tail(part_refs, acc_refs)
        else:
            _accum_full(part_refs, acc_refs)

        @pl.when(s == last)
        def _finalize():
            inv_s = jnp.float32(1.0 / S)
            outs = []
            for i, (M, C) in enumerate(specs):
                # Single cross-lane reduce per part, once per kernel.
                mean = jnp.sum(acc_refs[i][...], axis=-1) * inv_s   # (TB, M*C)
                sq = mean * mean
                ssum = sq[:, 0:C]
                for m in range(1, M):                # sum of squares over M
                    ssum = ssum + sq[:, m * C:(m + 1) * C]
                outs.append(ssum)                    # (TB, C_l)
            nrm = jnp.sqrt(jnp.concatenate(outs, axis=1))           # (TB, sum C)
            out_ref[...] = nrm.astype(out_ref.dtype)  # one output store

    return kernel


def _choose_tb(B):
    """The output block is (TB, csum): TB must be a multiple of 8 or equal B
    (sublane rule).  Among legal choices prefer >= 2 blocks along the parallel
    batch axis so both v7x TensorCores get work (harmless on v5e/v6e)."""
    if B < 8 or B % 8 != 0:
        return B                    # TB == full batch dim: always legal
    divisors = [d for d in range(8, B + 1, 8) if B % d == 0]
    split = [d for d in divisors if B // d >= 2]
    return max(split) if split else max(divisors)


def _choose_ts(S, total_mc, tb, itemsize, budget_bytes, buffer_count):
    """Spatial tile: multiple of 128, as large as the input-block VMEM budget
    allows (kernel is HBM-bandwidth-bound: long contiguous DMA runs and few
    grid steps are the main lever).  Returns (TS, needs_mask, num_s_tiles)."""
    per_lane_bytes = buffer_count * tb * total_mc * itemsize
    max_ts = (budget_bytes // max(1, per_lane_bytes)) // _LANE * _LANE
    # Cap so the unrolled 128-lane accumulate loop stays compact.
    lane_cap = 8192 * max(1, 4 // itemsize)
    max_ts = max(_LANE, min(max_ts, lane_cap))

    s_ceil = pl.cdiv(S, _LANE) * _LANE
    if s_ceil <= max_ts:
        # Whole spatial extent in a single tile (mask only if not lane-aligned).
        return s_ceil, (s_ceil != S), 1

    # Prefer the large tile with one masked tail over a small exact divisor:
    # only accept an exact divisor if it is at least max_ts / 2.
    for ts in range(max_ts, max_ts // 2 - 1, -_LANE):
        if ts >= _LANE and S % ts == 0:
            return ts, False, S // ts
    return max_ts, True, pl.cdiv(S, max_ts)


def se3_norm_flatten(parts, *, input_vmem_budget_bytes=14 << 20, buffer_count=2):
    """parts: list of (B, 2l+1, C_l, D, H, W) arrays -> (B, sum_l C_l)."""
    assert len(parts) >= 1
    B = parts[0].shape[0]
    spatial = parts[0].shape[3:]
    for p in parts:
        assert p.shape[0] == B
        # TODO(synk): fall back to per-part calls if parts ever have differing
        # spatial extents (SE3 conv outputs share one spatial grid).
        assert p.shape[3:] == spatial

    S = 1
    for d in spatial:
        S *= int(d)

    specs = [(int(p.shape[1]), int(p.shape[2])) for p in parts]
    csum = sum(c for _, c in specs)
    total_mc = sum(m * c for m, c in specs)
    out_dtype = jnp.result_type(*[p.dtype for p in parts])
    itemsize = max(jnp.dtype(p.dtype).itemsize for p in parts)

    TB = _choose_tb(B)
    TS, needs_mask, num_s_tiles = _choose_ts(
        S, total_mc, TB, itemsize, input_vmem_budget_bytes, buffer_count)
    grid = (B // TB, num_s_tiles)

    # Free views: collapse (M, C) -> sublane axis, (D, H, W) -> lane axis.
    xs = [p.reshape(B, m * c, S) for p, (m, c) in zip(parts, specs)]

    in_specs = []
    for (m, c) in specs:
        kwargs = {}
        if buffer_count != 2:       # 2 == Pallas default double-buffering
            kwargs["pipeline_mode"] = pl.Buffered(buffer_count)
        in_specs.append(
            pl.BlockSpec((TB, m * c, TS), lambda b, s: (b, 0, s), **kwargs))
    out_spec = pl.BlockSpec((TB, csum), lambda b, s: (b, 0))
    # Lane-wide accumulators: hot loop stays pure vld + vadd; single
    # cross-lane reduce per part at finalize.
    scratch = [pltpu.VMEM((TB, m * c, _LANE), jnp.float32) for (m, c) in specs]

    in_bytes = sum(int(p.size) * jnp.dtype(p.dtype).itemsize for p in parts)
    out_bytes = B * csum * jnp.dtype(out_dtype).itemsize
    cost = pl.CostEstimate(
        flops=sum(B * m * c * S for m, c in specs),
        transcendentals=B * csum,
        bytes_accessed=in_bytes + out_bytes,
    )

    kernel = _make_kernel(specs, S, TS, num_s_tiles, needs_mask)
    return pl.pallas_call(
        kernel,
        out_shape=jax.ShapeDtypeStruct((B, csum), out_dtype),
        grid=grid,
        in_specs=in_specs,
        out_specs=out_spec,
        scratch_shapes=scratch,
        compiler_params=pltpu.CompilerParams(
            dimension_semantics=("parallel", "arbitrary"),
            # Explicit scoped-VMEM limit: >= every generation's default
            # (v5e's is 16 MiB) and well under v7x's 64 MiB physical VMEM.
            vmem_limit_bytes=32 << 20),
        cost_estimate=cost,
    )(*xs)


def se3_norm_flatten_ref(parts):
    outs = []
    for p in parts:
        flat = p.reshape(p.shape[0], p.shape[1], p.shape[2], -1)
        m = jnp.mean(flat.astype(jnp.float32), axis=-1)
        outs.append(jnp.sqrt(jnp.sum(m * m, axis=1)))
    out_dtype = jnp.result_type(*[p.dtype for p in parts])
    return jnp.concatenate(outs, axis=1).astype(out_dtype)


if __name__ == "__main__":
    key = jax.random.PRNGKey(0)
    B, D = 2, 16  # batch, cubic spatial extent -> S = 4096 (single 4096-lane tile)

    # Steerable parts for l = 0, 1, 2: multiplicities 1, 3, 5; channels 4, 3, 2.
    part_specs = [(1, 4), (3, 3), (5, 2)]
    parts = []
    for (M, C) in part_specs:
        key, sub = jax.random.split(key)
        parts.append(jax.random.normal(sub, (B, M, C, D, D, D), dtype=jnp.float32))

    out = jax.block_until_ready(se3_norm_flatten(parts))
    ref = jax.block_until_ready(se3_norm_flatten_ref(parts))

    assert out.shape == (B, sum(c for _, c in part_specs)), out.shape
    assert jnp.allclose(out, ref, atol=1e-5, rtol=1e-5), float(
        jnp.max(jnp.abs(out - ref)))
    print("KERNEL_OK")
</pallas_src>

<mosaic_0001>
module attributes {stable_mosaic.version = 11 : i64} {
  func.func @kernel(%arg0: i32, %arg1: i32, %arg2: memref<2x4x4096xf32, #tpu.memory_space<vmem>>, %arg3: memref<2x9x4096xf32, #tpu.memory_space<vmem>>, %arg4: memref<2x10x4096xf32, #tpu.memory_space<vmem>>, %arg5: memref<2x9xf32, #tpu.memory_space<vmem>>, %arg6: memref<2x4x128xf32, #tpu.memory_space<vmem>>, %arg7: memref<2x9x128xf32, #tpu.memory_space<vmem>>, %arg8: memref<2x10x128xf32, #tpu.memory_space<vmem>>) attributes {dimension_semantics = [#tpu.dimension_semantics<parallel>, #tpu.dimension_semantics<arbitrary>], iteration_bounds = array<i64: 1, 1>, scalar_prefetch = 0 : i64, scratch_operands = 3 : i64, tpu.core_type = #tpu.core_type<tc>, window_params = [{transform_indices = @transform_0, window_bounds = array<i64: 2, 4, 4096>}, {transform_indices = @transform_1, window_bounds = array<i64: 2, 9, 4096>}, {transform_indices = @transform_2, window_bounds = array<i64: 2, 10, 4096>}, {transform_indices = @transform_3, window_bounds = array<i64: 2, 9>}]} {
    %c0_i32 = arith.constant 0 : i32
    %0 = arith.cmpi eq, %arg1, %c0_i32 : i32
    %1 = arith.extui %0 : i1 to i32
    %c0_i32_0 = arith.constant 0 : i32
    %2 = arith.cmpi ne, %1, %c0_i32_0 : i32
    scf.if %2 {
      %cst = arith.constant 0.000000e+00 : f32
      %204 = vector.broadcast %cst : f32 to vector<2x4x128xf32>
      %c0_277 = arith.constant 0 : index
      %c0_278 = arith.constant 0 : index
      %c0_279 = arith.constant 0 : index
      %205 = vector.load %arg6[%c0_277, %c0_278, %c0_279] : memref<2x4x128xf32, #tpu.memory_space<vmem>>, vector<2x4x128xf32>
      tpu.vector_store %arg6[%c0_277, %c0_278, %c0_279], %204 {strides = array<i32>} : memref<2x4x128xf32, #tpu.memory_space<vmem>>, vector<2x4x128xf32>,
      %cst_280 = arith.constant 0.000000e+00 : f32
      %206 = vector.broadcast %cst_280 : f32 to vector<2x9x128xf32>
      %c0_281 = arith.constant 0 : index
      %c0_282 = arith.constant 0 : index
      %c0_283 = arith.constant 0 : index
      %207 = vector.load %arg7[%c0_281, %c0_282, %c0_283] : memref<2x9x128xf32, #tpu.memory_space<vmem>>, vector<2x9x128xf32>
      tpu.vector_store %arg7[%c0_281, %c0_282, %c0_283], %206 {strides = array<i32>} : memref<2x9x128xf32, #tpu.memory_space<vmem>>, vector<2x9x128xf32>,
      %cst_284 = arith.constant 0.000000e+00 : f32
      %208 = vector.broadcast %cst_284 : f32 to vector<2x10x128xf32>
      %c0_285 = arith.constant 0 : index
      %c0_286 = arith.constant 0 : index
      %c0_287 = arith.constant 0 : index
      %209 = vector.load %arg8[%c0_285, %c0_286, %c0_287] : memref<2x10x128xf32, #tpu.memory_space<vmem>>, vector<2x10x128xf32>
      tpu.vector_store %arg8[%c0_285, %c0_286, %c0_287], %208 {strides = array<i32>} : memref<2x10x128xf32, #tpu.memory_space<vmem>>, vector<2x10x128xf32>,
    } else {
    }
    %c0 = arith.constant 0 : index
    %c0_1 = arith.constant 0 : index
    %c0_2 = arith.constant 0 : index
    %3 = vector.load %arg2[%c0, %c0_1, %c0_2] : memref<2x4x4096xf32, #tpu.memory_space<vmem>>, vector<2x4x128xf32>
    %c0_3 = arith.constant 0 : index
    %c0_4 = arith.constant 0 : index
    %c128 = arith.constant 128 : index
    %4 = vector.load %arg2[%c0_3, %c0_4, %c128] : memref<2x4x4096xf32, #tpu.memory_space<vmem>>, vector<2x4x128xf32>
    %5 = arith.addf %3, %4 : vector<2x4x128xf32>
    %c0_5 = arith.constant 0 : index
    %c0_6 = arith.constant 0 : index
    %c256 = arith.constant 256 : index
    %6 = vector.load %arg2[%c0_5, %c0_6, %c256] : memref<2x4x4096xf32, #tpu.memory_space<vmem>>, vector<2x4x128xf32>
    %7 = arith.addf %5, %6 : vector<2x4x128xf32>
    %c0_7 = arith.constant 0 : index
    %c0_8 = arith.constant 0 : index
    %c384 = arith.constant 384 : index
    %8 = vector.load %arg2[%c0_7, %c0_8, %c384] : memref<2x4x4096xf32, #tpu.memory_space<vmem>>, vector<2x4x128xf32>
    %9 = arith.addf %7, %8 : vector<2x4x128xf32>
    %c0_9 = arith.constant 0 : index
    %c0_10 = arith.constant 0 : index
    %c512 = arith.constant 512 : index
    %10 = vector.load %arg2[%c0_9, %c0_10, %c512] : memref<2x4x4096xf32, #tpu.memory_space<vmem>>, vector<2x4x128xf32>
    %11 = arith.addf %9, %10 : vector<2x4x128xf32>
    %c0_11 = arith.constant 0 : index
    %c0_12 = arith.constant 0 : index
    %c640 = arith.constant 640 : index
    %12 = vector.load %arg2[%c0_11, %c0_12, %c640] : memref<2x4x4096xf32, #tpu.memory_space<vmem>>, vector<2x4x128xf32>
    %13 = arith.addf %11, %12 : vector<2x4x128xf32>
    %c0_13 = arith.constant 0 : index
    %c0_14 = arith.constant 0 : index
    %c768 = arith.constant 768 : index
    %14 = vector.load %arg2[%c0_13, %c0_14, %c768] : memref<2x4x4096xf32, #tpu.memory_space<vmem>>, vector<2x4x128xf32>
    %15 = arith.addf %13, %14 : vector<2x4x128xf32>
    %c0_15 = arith.constant 0 : index
    %c0_16 = arith.constant 0 : index
    %c896 = arith.constant 896 : index
    %16 = vector.load %arg2[%c0_15, %c0_16, %c896] : memref<2x4x4096xf32, #tpu.memory_space<vmem>>, vector<2x4x128xf32>
    %17 = arith.addf %15, %16 : vector<2x4x128xf32>
    %c0_17 = arith.constant 0 : index
    %c0_18 = arith.constant 0 : index
    %c1024 = arith.constant 1024 : index
    %18 = vector.load %arg2[%c0_17, %c0_18, %c1024] : memref<2x4x4096xf32, #tpu.memory_space<vmem>>, vector<2x4x128xf32>
    %19 = arith.addf %17, %18 : vector<2x4x128xf32>
    %c0_19 = arith.constant 0 : index
    %c0_20 = arith.constant 0 : index
    %c1152 = arith.constant 1152 : index
    %20 = vector.load %arg2[%c0_19, %c0_20, %c1152] : memref<2x4x4096xf32, #tpu.memory_space<vmem>>, vector<2x4x128xf32>
    %21 = arith.addf %19, %20 : vector<2x4x128xf32>
    %c0_21 = arith.constant 0 : index
    %c0_22 = arith.constant 0 : index
    %c1280 = arith.constant 1280 : index
    %22 = vector.load %arg2[%c0_21, %c0_22, %c1280] : memref<2x4x4096xf32, #tpu.memory_space<vmem>>, vector<2x4x128xf32>
    %23 = arith.addf %21, %22 : vector<2x4x128xf32>
    %c0_23 = arith.constant 0 : index
    %c0_24 = arith.constant 0 : index
    %c1408 = arith.constant 1408 : index
    %24 = vector.load %arg2[%c0_23, %c0_24, %c1408] : memref<2x4x4096xf32, #tpu.memory_space<vmem>>, vector<2x4x128xf32>
    %25 = arith.addf %23, %24 : vector<2x4x128xf32>
    %c0_25 = arith.constant 0 : index
    %c0_26 = arith.constant 0 : index
    %c1536 = arith.constant 1536 : index
    %26 = vector.load %arg2[%c0_25, %c0_26, %c1536] : memref<2x4x4096xf32, #tpu.memory_space<vmem>>, vector<2x4x128xf32>
    %27 = arith.addf %25, %26 : vector<2x4x128xf32>
    %c0_27 = arith.constant 0 : index
    %c0_28 = arith.constant 0 : index
    %c1664 = arith.constant 1664 : index
    %28 = vector.load %arg2[%c0_27, %c0_28, %c1664] : memref<2x4x4096xf32, #tpu.memory_space<vmem>>, vector<2x4x128xf32>
    %29 = arith.addf %27, %28 : vector<2x4x128xf32>
    %c0_29 = arith.constant 0 : index
    %c0_30 = arith.constant 0 : index
    %c1792 = arith.constant 1792 : index
    %30 = vector.load %arg2[%c0_29, %c0_30, %c1792] : memref<2x4x4096xf32, #tpu.memory_space<vmem>>, vector<2x4x128xf32>
    %31 = arith.addf %29, %30 : vector<2x4x128xf32>
    %c0_31 = arith.constant 0 : index
    %c0_32 = arith.constant 0 : index
    %c1920 = arith.constant 1920 : index
    %32 = vector.load %arg2[%c0_31, %c0_32, %c1920] : memref<2x4x4096xf32, #tpu.memory_space<vmem>>, vector<2x4x128xf32>
    %33 = arith.addf %31, %32 : vector<2x4x128xf32>
    %c0_33 = arith.constant 0 : index
    %c0_34 = arith.constant 0 : index
    %c2048 = arith.constant 2048 : index
    %34 = vector.load %arg2[%c0_33, %c0_34, %c2048] : memref<2x4x4096xf32, #tpu.memory_space<vmem>>, vector<2x4x128xf32>
    %35 = arith.addf %33, %34 : vector<2x4x128xf32>
    %c0_35 = arith.constant 0 : index
    %c0_36 = arith.constant 0 : index
    %c2176 = arith.constant 2176 : index
    %36 = vector.load %arg2[%c0_35, %c0_36, %c2176] : memref<2x4x4096xf32, #tpu.memory_space<vmem>>, vector<2x4x128xf32>
    %37 = arith.addf %35, %36 : vector<2x4x128xf32>
    %c0_37 = arith.constant 0 : index
    %c0_38 = arith.constant 0 : index
    %c2304 = arith.constant 2304 : index
    %38 = vector.load %arg2[%c0_37, %c0_38, %c2304] : memref<2x4x4096xf32, #tpu.memory_space<vmem>>, vector<2x4x128xf32>
    %39 = arith.addf %37, %38 : vector<2x4x128xf32>
    %c0_39 = arith.constant 0 : index
    %c0_40 = arith.constant 0 : index
    %c2432 = arith.constant 2432 : index
    %40 = vector.load %arg2[%c0_39, %c0_40, %c2432] : memref<2x4x4096xf32, #tpu.memory_space<vmem>>, vector<2x4x128xf32>
    %41 = arith.addf %39, %40 : vector<2x4x128xf32>
    %c0_41 = arith.constant 0 : index
    %c0_42 = arith.constant 0 : index
    %c2560 = arith.constant 2560 : index
    %42 = vector.load %arg2[%c0_41, %c0_42, %c2560] : memref<2x4x4096xf32, #tpu.memory_space<vmem>>, vector<2x4x128xf32>
    %43 = arith.addf %41, %42 : vector<2x4x128xf32>
    %c0_43 = arith.constant 0 : index
    %c0_44 = arith.constant 0 : index
    %c2688 = arith.constant 2688 : index
    %44 = vector.load %arg2[%c0_43, %c0_44, %c2688] : memref<2x4x4096xf32, #tpu.memory_space<vmem>>, vector<2x4x128xf32>
    %45 = arith.addf %43, %44 : vector<2x4x128xf32>
    %c0_45 = arith.constant 0 : index
    %c0_46 = arith.constant 0 : index
    %c2816 = arith.constant 2816 : index
    %46 = vector.load %arg2[%c0_45, %c0_46, %c2816] : memref<2x4x4096xf32, #tpu.memory_space<vmem>>, vector<2x4x128xf32>
    %47 = arith.addf %45, %46 : vector<2x4x128xf32>
    %c0_47 = arith.constant 0 : index
    %c0_48 = arith.constant 0 : index
    %c2944 = arith.constant 2944 : index
    %48 = vector.load %arg2[%c0_47, %c0_48, %c2944] : memref<2x4x4096xf32, #tpu.memory_space<vmem>>, vector<2x4x128xf32>
    %49 = arith.addf %47, %48 : vector<2x4x128xf32>
    %c0_49 = arith.constant 0 : index
    %c0_50 = arith.constant 0 : index
    %c3072 = arith.constant 3072 : index
    %50 = vector.load %arg2[%c0_49, %c0_50, %c3072] : memref<2x4x4096xf32, #tpu.memory_space<vmem>>, vector<2x4x128xf32>
    %51 = arith.addf %49, %50 : vector<2x4x128xf32>
    %c0_51 = arith.constant 0 : index
    %c0_52 = arith.constant 0 : index
    %c3200 = arith.constant 3200 : index
    %52 = vector.load %arg2[%c0_51, %c0_52, %c3200] : memref<2x4x4096xf32, #tpu.memory_space<vmem>>, vector<2x4x128xf32>
    %53 = arith.addf %51, %52 : vector<2x4x128xf32>
    %c0_53 = arith.constant 0 : index
    %c0_54 = arith.constant 0 : index
    %c3328 = arith.constant 3328 : index
    %54 = vector.load %arg2[%c0_53, %c0_54, %c3328] : memref<2x4x4096xf32, #tpu.memory_space<vmem>>, vector<2x4x128xf32>
    %55 = arith.addf %53, %54 : vector<2x4x128xf32>
    %c0_55 = arith.constant 0 : index
    %c0_56 = arith.constant 0 : index
    %c3456 = arith.constant 3456 : index
    %56 = vector.load %arg2[%c0_55, %c0_56, %c3456] : memref<2x4x4096xf32, #tpu.memory_space<vmem>>, vector<2x4x128xf32>
    %57 = arith.addf %55, %56 : vector<2x4x128xf32>
    %c0_57 = arith.constant 0 : index
    %c0_58 = arith.constant 0 : index
    %c3584 = arith.constant 3584 : index
    %58 = vector.load %arg2[%c0_57, %c0_58, %c3584] : memref<2x4x4096xf32, #tpu.memory_space<vmem>>, vector<2x4x128xf32>
    %59 = arith.addf %57, %58 : vector<2x4x128xf32>
    %c0_59 = arith.constant 0 : index
    %c0_60 = arith.constant 0 : index
    %c3712 = arith.constant 3712 : index
    %60 = vector.load %arg2[%c0_59, %c0_60, %c3712] : memref<2x4x4096xf32, #tpu.memory_space<vmem>>, vector<2x4x128xf32>
    %61 = arith.addf %59, %60 : vector<2x4x128xf32>
    %c0_61 = arith.constant 0 : index
    %c0_62 = arith.constant 0 : index
    %c3840 = arith.constant 3840 : index
    %62 = vector.load %arg2[%c0_61, %c0_62, %c3840] : memref<2x4x4096xf32, #tpu.memory_space<vmem>>, vector<2x4x128xf32>
    %63 = arith.addf %61, %62 : vector<2x4x128xf32>
    %c0_63 = arith.constant 0 : index
    %c0_64 = arith.constant 0 : index
    %c3968 = arith.constant 3968 : index
    %64 = vector.load %arg2[%c0_63, %c0_64, %c3968] : memref<2x4x4096xf32, #tpu.memory_space<vmem>>, vector<2x4x128xf32>
    %65 = arith.addf %63, %64 : vector<2x4x128xf32>
    %c0_65 = arith.constant 0 : index
    %c0_66 = arith.constant 0 : index
    %c0_67 = arith.constant 0 : index
    %66 = vector.load %arg6[%c0_65, %c0_66, %c0_67] : memref<2x4x128xf32, #tpu.memory_space<vmem>>, vector<2x4x128xf32>
    %67 = arith.addf %66, %65 : vector<2x4x128xf32>
    %c0_68 = arith.constant 0 : index
    %c0_69 = arith.constant 0 : index
    %c0_70 = arith.constant 0 : index
    %68 = vector.load %arg6[%c0_68, %c0_69, %c0_70] : memref<2x4x128xf32, #tpu.memory_space<vmem>>, vector<2x4x128xf32>
    tpu.vector_store %arg6[%c0_68, %c0_69, %c0_70], %67 {strides = array<i32>} : memref<2x4x128xf32, #tpu.memory_space<vmem>>, vector<2x4x128xf32>,
    %c0_71 = arith.constant 0 : index
    %c0_72 = arith.constant 0 : index
    %c0_73 = arith.constant 0 : index
    %69 = vector.load %arg3[%c0_71, %c0_72, %c0_73] : memref<2x9x4096xf32, #tpu.memory_space<vmem>>, vector<2x9x128xf32>
    %c0_74 = arith.constant 0 : index
    %c0_75 = arith.constant 0 : index
    %c128_76 = arith.constant 128 : index
    %70 = vector.load %arg3[%c0_74, %c0_75, %c128_76] : memref<2x9x4096xf32, #tpu.memory_space<vmem>>, vector<2x9x128xf32>
    %71 = arith.addf %69, %70 : vector<2x9x128xf32>
    %c0_77 = arith.constant 0 : index
    %c0_78 = arith.constant 0 : index
    %c256_79 = arith.constant 256 : index
    %72 = vector.load %arg3[%c0_77, %c0_78, %c256_79] : memref<2x9x4096xf32, #tpu.memory_space<vmem>>, vector<2x9x128xf32>
    %73 = arith.addf %71, %72 : vector<2x9x128xf32>
    %c0_80 = arith.constant 0 : index
    %c0_81 = arith.constant 0 : index
    %c384_82 = arith.constant 384 : index
    %74 = vector.load %arg3[%c0_80, %c0_81, %c384_82] : memref<2x9x4096xf32, #tpu.memory_space<vmem>>, vector<2x9x128xf32>
    %75 = arith.addf %73, %74 : vector<2x9x128xf32>
    %c0_83 = arith.constant 0 : index
    %c0_84 = arith.constant 0 : index
    %c512_85 = arith.constant 512 : index
    %76 = vector.load %arg3[%c0_83, %c0_84, %c512_85] : memref<2x9x4096xf32, #tpu.memory_space<vmem>>, vector<2x9x128xf32>
    %77 = arith.addf %75, %76 : vector<2x9x128xf32>
    %c0_86 = arith.constant 0 : index
    %c0_87 = arith.constant 0 : index
    %c640_88 = arith.constant 640 : index
    %78 = vector.load %arg3[%c0_86, %c0_87, %c640_88] : memref<2x9x4096xf32, #tpu.memory_space<vmem>>, vector<2x9x128xf32>
    %79 = arith.addf %77, %78 : vector<2x9x128xf32>
    %c0_89 = arith.constant 0 : index
    %c0_90 = arith.constant 0 : index
    %c768_91 = arith.constant 768 : index
    %80 = vector.load %arg3[%c0_89, %c0_90, %c768_91] : memref<2x9x4096xf32, #tpu.memory_space<vmem>>, vector<2x9x128xf32>
    %81 = arith.addf %79, %80 : vector<2x9x128xf32>
    %c0_92 = arith.constant 0 : index
    %c0_93 = arith.constant 0 : index
    %c896_94 = arith.constant 896 : index
    %82 = vector.load %arg3[%c0_92, %c0_93, %c896_94] : memref<2x9x4096xf32, #tpu.memory_space<vmem>>, vector<2x9x128xf32>
    %83 = arith.addf %81, %82 : vector<2x9x128xf32>
    %c0_95 = arith.constant 0 : index
    %c0_96 = arith.constant 0 : index
    %c1024_97 = arith.constant 1024 : index
    %84 = vector.load %arg3[%c0_95, %c0_96, %c1024_97] : memref<2x9x4096xf32, #tpu.memory_space<vmem>>, vector<2x9x128xf32>
    %85 = arith.addf %83, %84 : vector<2x9x128xf32>
    %c0_98 = arith.constant 0 : index
    %c0_99 = arith.constant 0 : index
    %c1152_100 = arith.constant 1152 : index
    %86 = vector.load %arg3[%c0_98, %c0_99, %c1152_100] : memref<2x9x4096xf32, #tpu.memory_space<vmem>>, vector<2x9x128xf32>
    %87 = arith.addf %85, %86 : vector<2x9x128xf32>
    %c0_101 = arith.constant 0 : index
    %c0_102 = arith.constant 0 : index
    %c1280_103 = arith.constant 1280 : index
    %88 = vector.load %arg3[%c0_101, %c0_102, %c1280_103] : memref<2x9x4096xf32, #tpu.memory_space<vmem>>, vector<2x9x128xf32>
    %89 = arith.addf %87, %88 : vector<2x9x128xf32>
    %c0_104 = arith.constant 0 : index
    %c0_105 = arith.constant 0 : index
    %c1408_106 = arith.constant 1408 : index
    %90 = vector.load %arg3[%c0_104, %c0_105, %c1408_106] : memref<2x9x4096xf32, #tpu.memory_space<vmem>>, vector<2x9x128xf32>
    %91 = arith.addf %89, %90 : vector<2x9x128xf32>
    %c0_107 = arith.constant 0 : index
    %c0_108 = arith.constant 0 : index
    %c1536_109 = arith.constant 1536 : index
    %92 = vector.load %arg3[%c0_107, %c0_108, %c1536_109] : memref<2x9x4096xf32, #tpu.memory_space<vmem>>, vector<2x9x128xf32>
    %93 = arith.addf %91, %92 : vector<2x9x128xf32>
    %c0_110 = arith.constant 0 : index
    %c0_111 = arith.constant 0 : index
    %c1664_112 = arith.constant 1664 : index
    %94 = vector.load %arg3[%c0_110, %c0_111, %c1664_112] : memref<2x9x4096xf32, #tpu.memory_space<vmem>>, vector<2x9x128xf32>
    %95 = arith.addf %93, %94 : vector<2x9x128xf32>
    %c0_113 = arith.constant 0 : index
    %c0_114 = arith.constant 0 : index
    %c1792_115 = arith.constant 1792 : index
    %96 = vector.load %arg3[%c0_113, %c0_114, %c1792_115] : memref<2x9x4096xf32, #tpu.memory_space<vmem>>, vector<2x9x128xf32>
    %97 = arith.addf %95, %96 : vector<2x9x128xf32>
    %c0_116 = arith.constant 0 : index
    %c0_117 = arith.constant 0 : index
    %c1920_118 = arith.constant 1920 : index
    %98 = vector.load %arg3[%c0_116, %c0_117, %c1920_118] : memref<2x9x4096xf32, #tpu.memory_space<vmem>>, vector<2x9x128xf32>
    %99 = arith.addf %97, %98 : vector<2x9x128xf32>
    %c0_119 = arith.constant 0 : index
    %c0_120 = arith.constant 0 : index
    %c2048_121 = arith.constant 2048 : index
    %100 = vector.load %arg3[%c0_119, %c0_120, %c2048_121] : memref<2x9x4096xf32, #tpu.memory_space<vmem>>, vector<2x9x128xf32>
    %101 = arith.addf %99, %100 : vector<2x9x128xf32>
    %c0_122 = arith.constant 0 : index
    %c0_123 = arith.constant 0 : index
    %c2176_124 = arith.constant 2176 : index
    %102 = vector.load %arg3[%c0_122, %c0_123, %c2176_124] : memref<2x9x4096xf32, #tpu.memory_space<vmem>>, vector<2x9x128xf32>
    %103 = arith.addf %101, %102 : vector<2x9x128xf32>
    %c0_125 = arith.constant 0 : index
    %c0_126 = arith.constant 0 : index
    %c2304_127 = arith.constant 2304 : index
    %104 = vector.load %arg3[%c0_125, %c0_126, %c2304_127] : memref<2x9x4096xf32, #tpu.memory_space<vmem>>, vector<2x9x128xf32>
    %105 = arith.addf %103, %104 : vector<2x9x128xf32>
    %c0_128 = arith.constant 0 : index
    %c0_129 = arith.constant 0 : index
    %c2432_130 = arith.constant 2432 : index
    %106 = vector.load %arg3[%c0_128, %c0_129, %c2432_130] : memref<2x9x4096xf32, #tpu.memory_space<vmem>>, vector<2x9x128xf32>
    %107 = arith.addf %105, %106 : vector<2x9x128xf32>
    %c0_131 = arith.constant 0 : index
    %c0_132 = arith.constant 0 : index
    %c2560_133 = arith.constant 2560 : index
    %108 = vector.load %arg3[%c0_131, %c0_132, %c2560_133] : memref<2x9x4096xf32, #tpu.memory_space<vmem>>, vector<2x9x128xf32>
    %109 = arith.addf %107, %108 : vector<2x9x128xf32>
    %c0_134 = arith.constant 0 : index
    %c0_135 = arith.constant 0 : index
    %c2688_136 = arith.constant 2688 : index
    %110 = vector.load %arg3[%c0_134, %c0_135, %c2688_136] : memref<2x9x4096xf32, #tpu.memory_space<vmem>>, vector<2x9x128xf32>
    %111 = arith.addf %109, %110 : vector<2x9x128xf32>
    %c0_137 = arith.constant 0 : index
    %c0_138 = arith.constant 0 : index
    %c2816_139 = arith.constant 2816 : index
    %112 = vector.load %arg3[%c0_137, %c0_138, %c2816_139] : memref<2x9x4096xf32, #tpu.memory_space<vmem>>, vector<2x9x128xf32>
    %113 = arith.addf %111, %112 : vector<2x9x128xf32>
    %c0_140 = arith.constant 0 : index
    %c0_141 = arith.constant 0 : index
    %c2944_142 = arith.constant 2944 : index
    %114 = vector.load %arg3[%c0_140, %c0_141, %c2944_142] : memref<2x9x4096xf32, #tpu.memory_space<vmem>>, vector<2x9x128xf32>
    %115 = arith.addf %113, %114 : vector<2x9x128xf32>
    %c0_143 = arith.constant 0 : index
    %c0_144 = arith.constant 0 : index
    %c3072_145 = arith.constant 3072 : index
    %116 = vector.load %arg3[%c0_143, %c0_144, %c3072_145] : memref<2x9x4096xf32, #tpu.memory_space<vmem>>, vector<2x9x128xf32>
    %117 = arith.addf %115, %116 : vector<2x9x128xf32>
    %c0_146 = arith.constant 0 : index
    %c0_147 = arith.constant 0 : index
    %c3200_148 = arith.constant 3200 : index
    %118 = vector.load %arg3[%c0_146, %c0_147, %c3200_148] : memref<2x9x4096xf32, #tpu.memory_space<vmem>>, vector<2x9x128xf32>
    %119 = arith.addf %117, %118 : vector<2x9x128xf32>
    %c0_149 = arith.constant 0 : index
    %c0_150 = arith.constant 0 : index
    %c3328_151 = arith.constant 3328 : index
    %120 = vector.load %arg3[%c0_149, %c0_150, %c3328_151] : memref<2x9x4096xf32, #tpu.memory_space<vmem>>, vector<2x9x128xf32>
    %121 = arith.addf %119, %120 : vector<2x9x128xf32>
    %c0_152 = arith.constant 0 : index
    %c0_153 = arith.constant 0 : index
    %c3456_154 = arith.constant 3456 : index
    %122 = vector.load %arg3[%c0_152, %c0_153, %c3456_154] : memref<2x9x4096xf32, #tpu.memory_space<vmem>>, vector<2x9x128xf32>
    %123 = arith.addf %121, %122 : vector<2x9x128xf32>
    %c0_155 = arith.constant 0 : index
    %c0_156 = arith.constant 0 : index
    %c3584_157 = arith.constant 3584 : index
    %124 = vector.load %arg3[%c0_155, %c0_156, %c3584_157] : memref<2x9x4096xf32, #tpu.memory_space<vmem>>, vector<2x9x128xf32>
    %125 = arith.addf %123, %124 : vector<2x9x128xf32>
    %c0_158 = arith.constant 0 : index
    %c0_159 = arith.constant 0 : index
    %c3712_160 = arith.constant 3712 : index
    %126 = vector.load %arg3[%c0_158, %c0_159, %c3712_160] : memref<2x9x4096xf32, #tpu.memory_space<vmem>>, vector<2x9x128xf32>
    %127 = arith.addf %125, %126 : vector<2x9x128xf32>
    %c0_161 = arith.constant 0 : index
    %c0_162 = arith.constant 0 : index
    %c3840_163 = arith.constant 3840 : index
    %128 = vector.load %arg3[%c0_161, %c0_162, %c3840_163] : memref<2x9x4096xf32, #tpu.memory_space<vmem>>, vector<2x9x128xf32>
    %129 = arith.addf %127, %128 : vector<2x9x128xf32>
    %c0_164 = arith.constant 0 : index
    %c0_165 = arith.constant 0 : index
    %c3968_166 = arith.constant 3968 : index
    %130 = vector.load %arg3[%c0_164, %c0_165, %c3968_166] : memref<2x9x4096xf32, #tpu.memory_space<vmem>>, vector<2x9x128xf32>
    %131 = arith.addf %129, %130 : vector<2x9x128xf32>
    %c0_167 = arith.constant 0 : index
    %c0_168 = arith.constant 0 : index
    %c0_169 = arith.constant 0 : index
    %132 = vector.load %arg7[%c0_167, %c0_168, %c0_169] : memref<2x9x128xf32, #tpu.memory_space<vmem>>, vector<2x9x128xf32>
    %133 = arith.addf %132, %131 : vector<2x9x128xf32>
    %c0_170 = arith.constant 0 : index
    %c0_171 = arith.constant 0 : index
    %c0_172 = arith.constant 0 : index
    %134 = vector.load %arg7[%c0_170, %c0_171, %c0_172] : memref<2x9x128xf32, #tpu.memory_space<vmem>>, vector<2x9x128xf32>
    tpu.vector_store %arg7[%c0_170, %c0_171, %c0_172], %133 {strides = array<i32>} : memref<2x9x128xf32, #tpu.memory_space<vmem>>, vector<2x9x128xf32>,
    %c0_173 = arith.constant 0 : index
    %c0_174 = arith.constant 0 : index
    %c0_175 = arith.constant 0 : index
    %135 = vector.load %arg4[%c0_173, %c0_174, %c0_175] : memref<2x10x4096xf32, #tpu.memory_space<vmem>>, vector<2x10x128xf32>
    %c0_176 = arith.constant 0 : index
    %c0_177 = arith.constant 0 : index
    %c128_178 = arith.constant 128 : index
    %136 = vector.load %arg4[%c0_176, %c0_177, %c128_178] : memref<2x10x4096xf32, #tpu.memory_space<vmem>>, vector<2x10x128xf32>
    %137 = arith.addf %135, %136 : vector<2x10x128xf32>
    %c0_179 = arith.constant 0 : index
    %c0_180 = arith.constant 0 : index
    %c256_181 = arith.constant 256 : index
    %138 = vector.load %arg4[%c0_179, %c0_180, %c256_181] : memref<2x10x4096xf32, #tpu.memory_space<vmem>>, vector<2x10x128xf32>
    %139 = arith.addf %137, %138 : vector<2x10x128xf32>
    %c0_182 = arith.constant 0 : index
    %c0_183 = arith.constant 0 : index
    %c384_184 = arith.constant 384 : index
    %140 = vector.load %arg4[%c0_182, %c0_183, %c384_184] : memref<2x10x4096xf32, #tpu.memory_space<vmem>>, vector<2x10x128xf32>
    %141 = arith.addf %139, %140 : vector<2x10x128xf32>
    %c0_185 = arith.constant 0 : index
    %c0_186 = arith.constant 0 : index
    %c512_187 = arith.constant 512 : index
    %142 = vector.load %arg4[%c0_185, %c0_186, %c512_187] : memref<2x10x4096xf32, #tpu.memory_space<vmem>>, vector<2x10x128xf32>
    %143 = arith.addf %141, %142 : vector<2x10x128xf32>
    %c0_188 = arith.constant 0 : index
    %c0_189 = arith.constant 0 : index
    %c640_190 = arith.constant 640 : index
    %144 = vector.load %arg4[%c0_188, %c0_189, %c640_190] : memref<2x10x4096xf32, #tpu.memory_space<vmem>>, vector<2x10x128xf32>
    %145 = arith.addf %143, %144 : vector<2x10x128xf32>
    %c0_191 = arith.constant 0 : index
    %c0_192 = arith.constant 0 : index
    %c768_193 = arith.constant 768 : index
    %146 = vector.load %arg4[%c0_191, %c0_192, %c768_193] : memref<2x10x4096xf32, #tpu.memory_space<vmem>>, vector<2x10x128xf32>
    %147 = arith.addf %145, %146 : vector<2x10x128xf32>
    %c0_194 = arith.constant 0 : index
    %c0_195 = arith.constant 0 : index
    %c896_196 = arith.constant 896 : index
    %148 = vector.load %arg4[%c0_194, %c0_195, %c896_196] : memref<2x10x4096xf32, #tpu.memory_space<vmem>>, vector<2x10x128xf32>
    %149 = arith.addf %147, %148 : vector<2x10x128xf32>
    %c0_197 = arith.constant 0 : index
    %c0_198 = arith.constant 0 : index
    %c1024_199 = arith.constant 1024 : index
    %150 = vector.load %arg4[%c0_197, %c0_198, %c1024_199] : memref<2x10x4096xf32, #tpu.memory_space<vmem>>, vector<2x10x128xf32>
    %151 = arith.addf %149, %150 : vector<2x10x128xf32>
    %c0_200 = arith.constant 0 : index
    %c0_201 = arith.constant 0 : index
    %c1152_202 = arith.constant 1152 : index
    %152 = vector.load %arg4[%c0_200, %c0_201, %c1152_202] : memref<2x10x4096xf32, #tpu.memory_space<vmem>>, vector<2x10x128xf32>
    %153 = arith.addf %151, %152 : vector<2x10x128xf32>
    %c0_203 = arith.constant 0 : index
    %c0_204 = arith.constant 0 : index
    %c1280_205 = arith.constant 1280 : index
    %154 = vector.load %arg4[%c0_203, %c0_204, %c1280_205] : memref<2x10x4096xf32, #tpu.memory_space<vmem>>, vector<2x10x128xf32>
    %155 = arith.addf %153, %154 : vector<2x10x128xf32>
    %c0_206 = arith.constant 0 : index
    %c0_207 = arith.constant 0 : index
    %c1408_208 = arith.constant 1408 : index
    %156 = vector.load %arg4[%c0_206, %c0_207, %c1408_208] : memref<2x10x4096xf32, #tpu.memory_space<vmem>>, vector<2x10x128xf32>
    %157 = arith.addf %155, %156 : vector<2x10x128xf32>
    %c0_209 = arith.constant 0 : index
    %c0_210 = arith.constant 0 : index
    %c1536_211 = arith.constant 1536 : index
    %158 = vector.load %arg4[%c0_209, %c0_210, %c1536_211] : memref<2x10x4096xf32, #tpu.memory_space<vmem>>, vector<2x10x128xf32>
    %159 = arith.addf %157, %158 : vector<2x10x128xf32>
    %c0_212 = arith.constant 0 : index
    %c0_213 = arith.constant 0 : index
    %c1664_214 = arith.constant 1664 : index
    %160 = vector.load %arg4[%c0_212, %c0_213, %c1664_214] : memref<2x10x4096xf32, #tpu.memory_space<vmem>>, vector<2x10x128xf32>
    %161 = arith.addf %159, %160 : vector<2x10x128xf32>
    %c0_215 = arith.constant 0 : index
    %c0_216 = arith.constant 0 : index
    %c1792_217 = arith.constant 1792 : index
    %162 = vector.load %arg4[%c0_215, %c0_216, %c1792_217] : memref<2x10x4096xf32, #tpu.memory_space<vmem>>, vector<2x10x128xf32>
    %163 = arith.addf %161, %162 : vector<2x10x128xf32>
    %c0_218 = arith.constant 0 : index
    %c0_219 = arith.constant 0 : index
    %c1920_220 = arith.constant 1920 : index
    %164 = vector.load %arg4[%c0_218, %c0_219, %c1920_220] : memref<2x10x4096xf32, #tpu.memory_space<vmem>>, vector<2x10x128xf32>
    %165 = arith.addf %163, %164 : vector<2x10x128xf32>
    %c0_221 = arith.constant 0 : index
    %c0_222 = arith.constant 0 : index
    %c2048_223 = arith.constant 2048 : index
    %166 = vector.load %arg4[%c0_221, %c0_222, %c2048_223] : memref<2x10x4096xf32, #tpu.memory_space<vmem>>, vector<2x10x128xf32>
    %167 = arith.addf %165, %166 : vector<2x10x128xf32>
    %c0_224 = arith.constant 0 : index
    %c0_225 = arith.constant 0 : index
    %c2176_226 = arith.constant 2176 : index
    %168 = vector.load %arg4[%c0_224, %c0_225, %c2176_226] : memref<2x10x4096xf32, #tpu.memory_space<vmem>>, vector<2x10x128xf32>
    %169 = arith.addf %167, %168 : vector<2x10x128xf32>
    %c0_227 = arith.constant 0 : index
    %c0_228 = arith.constant 0 : index
    %c2304_229 = arith.constant 2304 : index
    %170 = vector.load %arg4[%c0_227, %c0_228, %c2304_229] : memref<2x10x4096xf32, #tpu.memory_space<vmem>>, vector<2x10x128xf32>
    %171 = arith.addf %169, %170 : vector<2x10x128xf32>
    %c0_230 = arith.constant 0 : index
    %c0_231 = arith.constant 0 : index
    %c2432_232 = arith.constant 2432 : index
    %172 = vector.load %arg4[%c0_230, %c0_231, %c2432_232] : memref<2x10x4096xf32, #tpu.memory_space<vmem>>, vector<2x10x128xf32>
    %173 = arith.addf %171, %172 : vector<2x10x128xf32>
    %c0_233 = arith.constant 0 : index
    %c0_234 = arith.constant 0 : index
    %c2560_235 = arith.constant 2560 : index
    %174 = vector.load %arg4[%c0_233, %c0_234, %c2560_235] : memref<2x10x4096xf32, #tpu.memory_space<vmem>>, vector<2x10x128xf32>
    %175 = arith.addf %173, %174 : vector<2x10x128xf32>
    %c0_236 = arith.constant 0 : index
    %c0_237 = arith.constant 0 : index
    %c2688_238 = arith.constant 2688 : index
    %176 = vector.load %arg4[%c0_236, %c0_237, %c2688_238] : memref<2x10x4096xf32, #tpu.memory_space<vmem>>, vector<2x10x128xf32>
    %177 = arith.addf %175, %176 : vector<2x10x128xf32>
    %c0_239 = arith.constant 0 : index
    %c0_240 = arith.constant 0 : index
    %c2816_241 = arith.constant 2816 : index
    %178 = vector.load %arg4[%c0_239, %c0_240, %c2816_241] : memref<2x10x4096xf32, #tpu.memory_space<vmem>>, vector<2x10x128xf32>
    %179 = arith.addf %177, %178 : vector<2x10x128xf32>
    %c0_242 = arith.constant 0 : index
    %c0_243 = arith.constant 0 : index
    %c2944_244 = arith.constant 2944 : index
    %180 = vector.load %arg4[%c0_242, %c0_243, %c2944_244] : memref<2x10x4096xf32, #tpu.memory_space<vmem>>, vector<2x10x128xf32>
    %181 = arith.addf %179, %180 : vector<2x10x128xf32>
    %c0_245 = arith.constant 0 : index
    %c0_246 = arith.constant 0 : index
    %c3072_247 = arith.constant 3072 : index
    %182 = vector.load %arg4[%c0_245, %c0_246, %c3072_247] : memref<2x10x4096xf32, #tpu.memory_space<vmem>>, vector<2x10x128xf32>
    %183 = arith.addf %181, %182 : vector<2x10x128xf32>
    %c0_248 = arith.constant 0 : index
    %c0_249 = arith.constant 0 : index
    %c3200_250 = arith.constant 3200 : index
    %184 = vector.load %arg4[%c0_248, %c0_249, %c3200_250] : memref<2x10x4096xf32, #tpu.memory_space<vmem>>, vector<2x10x128xf32>
    %185 = arith.addf %183, %184 : vector<2x10x128xf32>
    %c0_251 = arith.constant 0 : index
    %c0_252 = arith.constant 0 : index
    %c3328_253 = arith.constant 3328 : index
    %186 = vector.load %arg4[%c0_251, %c0_252, %c3328_253] : memref<2x10x4096xf32, #tpu.memory_space<vmem>>, vector<2x10x128xf32>
    %187 = arith.addf %185, %186 : vector<2x10x128xf32>
    %c0_254 = arith.constant 0 : index
    %c0_255 = arith.constant 0 : index
    %c3456_256 = arith.constant 3456 : index
    %188 = vector.load %arg4[%c0_254, %c0_255, %c3456_256] : memref<2x10x4096xf32, #tpu.memory_space<vmem>>, vector<2x10x128xf32>
    %189 = arith.addf %187, %188 : vector<2x10x128xf32>
    %c0_257 = arith.constant 0 : index
    %c0_258 = arith.constant 0 : index
    %c3584_259 = arith.constant 3584 : index
    %190 = vector.load %arg4[%c0_257, %c0_258, %c3584_259] : memref<2x10x4096xf32, #tpu.memory_space<vmem>>, vector<2x10x128xf32>
    %191 = arith.addf %189, %190 : vector<2x10x128xf32>
    %c0_260 = arith.constant 0 : index
    %c0_261 = arith.constant 0 : index
    %c3712_262 = arith.constant 3712 : index
    %192 = vector.load %arg4[%c0_260, %c0_261, %c3712_262] : memref<2x10x4096xf32, #tpu.memory_space<vmem>>, vector<2x10x128xf32>
    %193 = arith.addf %191, %192 : vector<2x10x128xf32>
    %c0_263 = arith.constant 0 : index
    %c0_264 = arith.constant 0 : index
    %c3840_265 = arith.constant 3840 : index
    %194 = vector.load %arg4[%c0_263, %c0_264, %c3840_265] : memref<2x10x4096xf32, #tpu.memory_space<vmem>>, vector<2x10x128xf32>
    %195 = arith.addf %193, %194 : vector<2x10x128xf32>
    %c0_266 = arith.constant 0 : index
    %c0_267 = arith.constant 0 : index
    %c3968_268 = arith.constant 3968 : index
    %196 = vector.load %arg4[%c0_266, %c0_267, %c3968_268] : memref<2x10x4096xf32, #tpu.memory_space<vmem>>, vector<2x10x128xf32>
    %197 = arith.addf %195, %196 : vector<2x10x128xf32>
    %c0_269 = arith.constant 0 : index
    %c0_270 = arith.constant 0 : index
    %c0_271 = arith.constant 0 : index
    %198 = vector.load %arg8[%c0_269, %c0_270, %c0_271] : memref<2x10x128xf32, #tpu.memory_space<vmem>>, vector<2x10x128xf32>
    %199 = arith.addf %198, %197 : vector<2x10x128xf32>
    %c0_272 = arith.constant 0 : index
    %c0_273 = arith.constant 0 : index
    %c0_274 = arith.constant 0 : index
    %200 = vector.load %arg8[%c0_272, %c0_273, %c0_274] : memref<2x10x128xf32, #tpu.memory_space<vmem>>, vector<2x10x128xf32>
    tpu.vector_store %arg8[%c0_272, %c0_273, %c0_274], %199 {strides = array<i32>} : memref<2x10x128xf32, #tpu.memory_space<vmem>>, vector<2x10x128xf32>,
    %c0_i32_275 = arith.constant 0 : i32
    %201 = arith.cmpi eq, %arg1, %c0_i32_275 : i32
    %202 = arith.extui %201 : i1 to i32
    %c0_i32_276 = arith.constant 0 : i32
    %203 = arith.cmpi ne, %202, %c0_i32_276 : i32
    scf.if %203 {
      %c0_277 = arith.constant 0 : index
      %c0_278 = arith.constant 0 : index
      %c0_279 = arith.constant 0 : index
      %204 = vector.load %arg6[%c0_277, %c0_278, %c0_279] : memref<2x4x128xf32, #tpu.memory_space<vmem>>, vector<2x4x128xf32>
      %cst = arith.constant dense<0.000000e+00> : vector<2x4xf32>
      %205 = vector.multi_reduction <add>, %204, %cst [2] : vector<2x4x128xf32> to vector<2x4xf32>
      %cst_280 = arith.constant 2.44140625E-4 : f32
      %206 = vector.broadcast %cst_280 : f32 to vector<2x4xf32>
      %207 = arith.mulf %205, %206 : vector<2x4xf32>
      %208 = arith.mulf %207, %207 : vector<2x4xf32>
      %c0_281 = arith.constant 0 : index
      %c0_282 = arith.constant 0 : index
      %c0_283 = arith.constant 0 : index
      %209 = vector.load %arg7[%c0_281, %c0_282, %c0_283] : memref<2x9x128xf32, #tpu.memory_space<vmem>>, vector<2x9x128xf32>
      %cst_284 = arith.constant dense<0.000000e+00> : vector<2x9xf32>
      %210 = vector.multi_reduction <add>, %209, %cst_284 [2] : vector<2x9x128xf32> to vector<2x9xf32>
      %cst_285 = arith.constant 2.44140625E-4 : f32
      %211 = vector.broadcast %cst_285 : f32 to vector<2x9xf32>
      %212 = arith.mulf %210, %211 : vector<2x9xf32>
      %213 = arith.mulf %212, %212 : vector<2x9xf32>
      %214 = vector.extract_strided_slice %213 {offsets = [0, 0], sizes = [2, 3], strides = [1, 1]} : vector<2x9xf32> to vector<2x3xf32>
      %215 = vector.extract_strided_slice %213 {offsets = [0, 3], sizes = [2, 3], strides = [1, 1]} : vector<2x9xf32> to vector<2x3xf32>
      %216 = arith.addf %214, %215 : vector<2x3xf32>
      %217 = vector.extract_strided_slice %213 {offsets = [0, 6], sizes = [2, 3], strides = [1, 1]} : vector<2x9xf32> to vector<2x3xf32>
      %218 = arith.addf %216, %217 : vector<2x3xf32>
      %c0_286 = arith.constant 0 : index
      %c0_287 = arith.constant 0 : index
      %c0_288 = arith.constant 0 : index
      %219 = vector.load %arg8[%c0_286, %c0_287, %c0_288] : memref<2x10x128xf32, #tpu.memory_space<vmem>>, vector<2x10x128xf32>
      %cst_289 = arith.constant dense<0.000000e+00> : vector<2x10xf32>
      %220 = vector.multi_reduction <add>, %219, %cst_289 [2] : vector<2x10x128xf32> to vector<2x10xf32>
      %cst_290 = arith.constant 2.44140625E-4 : f32
      %221 = vector.broadcast %cst_290 : f32 to vector<2x10xf32>
      %222 = arith.mulf %220, %221 : vector<2x10xf32>
      %223 = arith.mulf %222, %222 : vector<2x10xf32>
      %224 = vector.extract_strided_slice %223 {offsets = [0, 0], sizes = [2, 2], strides = [1, 1]} : vector<2x10xf32> to vector<2x2xf32>
      %225 = vector.extract_strided_slice %223 {offsets = [0, 2], sizes = [2, 2], strides = [1, 1]} : vector<2x10xf32> to vector<2x2xf32>
      %226 = arith.addf %224, %225 : vector<2x2xf32>
      %227 = vector.extract_strided_slice %223 {offsets = [0, 4], sizes = [2, 2], strides = [1, 1]} : vector<2x10xf32> to vector<2x2xf32>
      %228 = arith.addf %226, %227 : vector<2x2xf32>
      %229 = vector.extract_strided_slice %223 {offsets = [0, 6], sizes = [2, 2], strides = [1, 1]} : vector<2x10xf32> to vector<2x2xf32>
      %230 = arith.addf %228, %229 : vector<2x2xf32>
      %231 = vector.extract_strided_slice %223 {offsets = [0, 8], sizes = [2, 2], strides = [1, 1]} : vector<2x10xf32> to vector<2x2xf32>
      %232 = arith.addf %230, %231 : vector<2x2xf32>
      %233 = tpu.concatenate %208, %218, %232 in 1 : vector<2x4xf32>, vector<2x3xf32>, vector<2x2xf32> -> vector<2x9xf32>
      %234 = math.sqrt %233 : vector<2x9xf32>
      %c0_291 = arith.constant 0 : index
      %c0_292 = arith.constant 0 : index
      %235 = vector.load %arg5[%c0_291, %c0_292] : memref<2x9xf32, #tpu.memory_space<vmem>>, vector<2x9xf32>
      tpu.vector_store %arg5[%c0_291, %c0_292], %234 {strides = array<i32>} : memref<2x9xf32, #tpu.memory_space<vmem>>, vector<2x9xf32>,
    } else {
    }
    return
  }
  func.func @transform_0(%arg0: i32, %arg1: i32) -> (i32, i32, i32) {
    %c0_i32 = arith.constant 0 : i32
    %c0_i32_0 = arith.constant 0 : i32
    return %arg0, %c0_i32, %arg1 : i32, i32, i32
  }
  func.func @transform_1(%arg0: i32, %arg1: i32) -> (i32, i32, i32) {
    %c0_i32 = arith.constant 0 : i32
    %c0_i32_0 = arith.constant 0 : i32
    return %arg0, %c0_i32, %arg1 : i32, i32, i32
  }
  func.func @transform_2(%arg0: i32, %arg1: i32) -> (i32, i32, i32) {
    %c0_i32 = arith.constant 0 : i32
    %c0_i32_0 = arith.constant 0 : i32
    return %arg0, %c0_i32, %arg1 : i32, i32, i32
  }
  func.func @transform_3(%arg0: i32, %arg1: i32) -> (i32, i32) {
    %c0_i32 = arith.constant 0 : i32
    %c0_i32_0 = arith.constant 0 : i32
    return %arg0, %c0_i32 : i32, i32
  }
}

</mosaic_0001>

<bundles_post_ra>
// kernel: tpu_custom_call.1
= control target key start
LH: loop header
LB: loop body
LE: loop exit
PB: predicated region body
PF: predicated region fallthrough
CT: control target
= control target key end

     0   :  { %v896_v4 = vmov 0.0   ;;  %s1890_s0 = inlined_call_operand.vmem [shape: f32[2,4,4096], index: 0, kind: input, shape index: {}]   ;;  %s1891_s1 = inlined_call_operand.vmem [shape: f32[2,9,4096], index: 1, kind: input, shape index: {}]   ;;  %s1892_s2 = inlined_call_operand.vmem [shape: f32[2,10,4096], index: 2, kind: input, shape index: {}]   ;;  %s1893_s3 = inlined_call_operand.hbm [shape: f32[2,9], index: 3, kind: output, shape index: {}]  }
   0x1   :  { %v425_v0 = vld [vmem:[%s1892_s2] sm:$0xff]  ;;  %v429_v1 = vld [vmem:[%s1892_s2 + $0x8] sm:$0xff]  ;;  %v437_v2 = vld [vmem:[%s1892_s2 + $0x10] sm:$0xff]  ;;  %19 = vst [vmem:[#allocation2] sm:$0xf] %v896_v4 }
   0x2   :  { %v433_v3 = vadd.f32 %v429_v1, %v425_v0  ;;  %v445_v5 = vld [vmem:[%s1892_s2 + $0x18] sm:$0xff]  ;;  %20 = vst [vmem:[#allocation2 + $0x4] sm:$0xf] %v896_v4  ;;  %v453_v7 = vld [vmem:[%s1892_s2 + $0x20] sm:$0xff]  ;;  %v461_v9 = vld [vmem:[%s1892_s2 + $0x28] sm:$0xff] }
   0x3   :  { %22 = vst [vmem:[#allocation3] sm:$0x1] %v896_v4  ;;  %v161_v11 = vld [vmem:[%s1891_s1] sm:$0xff]  ;;  %v165_v12 = vld [vmem:[%s1891_s1 + $0x8] sm:$0xff]  ;;  %v469_v13 = vld [vmem:[%s1892_s2 + $0x30] sm:$0xff] }
   0x4   :  { %v441_v6 = vadd.f32 %v437_v2, %v433_v3  ;;  %24 = vst [vmem:[#allocation3 + $0x8] sm:$0x1] %v896_v4  ;;  %v169_v14 = vadd.f32 %v165_v12, %v161_v11  ;;  %v173_v15 = vld [vmem:[%s1891_s1 + $0x10] sm:$0xff]  ;;  %v181_v17 = vld [vmem:[%s1891_s1 + $0x18] sm:$0xff]  ;;  %v189_v21 = vld [vmem:[%s1891_s1 + $0x20] sm:$0xff] }
   0x5   :  { %26 = vst [vmem:[#allocation4 + $0x18] sm:$0x3] %v896_v4  ;;  %v477_v18 = vld [vmem:[%s1892_s2 + $0x38] sm:$0xff]  ;;  %v485_v22 = vld [vmem:[%s1892_s2 + $0x40] sm:$0xff]  ;;  %v197_v25 = vld [vmem:[%s1891_s1 + $0x28] sm:$0xff] }
   0x6   :  { %v449_v8 = vadd.f32 %v445_v5, %v441_v6  ;;  %28 = vst [vmem:[#allocation4 + $0x10] sm:$0x3] %v896_v4  ;;  %v177_v19 = vadd.f32 %v173_v15, %v169_v14  ;;  %v493_v26 = vld [vmem:[%s1892_s2 + $0x48] sm:$0xff]  ;;  %v501_v29 = vld [vmem:[%s1892_s2 + $0x50] sm:$0xff]  ;;  %v162_v32 = vld [vmem:[%s1891_s1 + $0x100] sm:$0x1] }
   0x7   :  { %v205_v30 = vld [vmem:[%s1891_s1 + $0x30] sm:$0xff]  ;;  %v166_v33 = vld [vmem:[%s1891_s1 + $0x108] sm:$0x1]  ;;  %v213_v36 = vld [vmem:[%s1891_s1 + $0x38] sm:$0xff] }
   0x8   :  { %v457_v10 = vadd.f32 %v453_v7, %v449_v8  ;;  %v185_v23 = vadd.f32 %v181_v17, %v177_v19  ;;  %v174_v34 = vld [vmem:[%s1891_s1 + $0x110] sm:$0x1]  ;;  %v170_v37 = vadd.f32 %v166_v33, %v162_v32  ;;  %v509_v38 = vld [vmem:[%s1892_s2 + $0x58] sm:$0xff]  ;;  %v221_v42 = vld [vmem:[%s1891_s1 + $0x40] sm:$0xff] }
   0x9   :  { %v182_v40 = vld [vmem:[%s1891_s1 + $0x118] sm:$0x1]  ;;  %v517_v44 = vld [vmem:[%s1892_s2 + $0x60] sm:$0xff]  ;;  %v229_v48 = vld [vmem:[%s1891_s1 + $0x48] sm:$0xff] }
   0xa   :  { %v465_v16 = vadd.f32 %v461_v9, %v457_v10  ;;  %v193_v27 = vadd.f32 %v189_v21, %v185_v23  ;;  %v178_v43 = vadd.f32 %v174_v34, %v170_v37  ;;  %v190_v46 = vld [vmem:[%s1891_s1 + $0x120] sm:$0x1]  ;;  %v525_v50 = vld [vmem:[%s1892_s2 + $0x68] sm:$0xff]  ;;  %v237_v54 = vld [vmem:[%s1891_s1 + $0x50] sm:$0xff] }
   0xb   :  { %v198_v52 = vld [vmem:[%s1891_s1 + $0x128] sm:$0x1]  ;;  %v533_v56 = vld [vmem:[%s1892_s2 + $0x70] sm:$0xff]  ;;  %v245_v60 = vld [vmem:[%s1891_s1 + $0x58] sm:$0xff] }
   0xc   :  { %v473_v20 = vadd.f32 %v469_v13, %v465_v16  ;;  %v201_v31 = vadd.f32 %v197_v25, %v193_v27  ;;  %v186_v49 = vadd.f32 %v182_v40, %v178_v43  ;;  %v206_v58 = vld [vmem:[%s1891_s1 + $0x130] sm:$0x1]  ;;  %v541_v62 = vld [vmem:[%s1892_s2 + $0x78] sm:$0xff]  ;;  %v549_v2 = vld [vmem:[%s1892_s2 + $0x80] sm:$0xff] }
   0xd   :  { %v214_v0 = vld [vmem:[%s1891_s1 + $0x138] sm:$0x1]  ;;  %v253_v3 = vld [vmem:[%s1891_s1 + $0x60] sm:$0xff]  ;;  %v431_v8 = vld [vmem:[%s1892_s2 + $0x208] sm:$0xff] }
   0xe   :  { %v481_v24 = vadd.f32 %v477_v18, %v473_v20  ;;  %v209_v39 = vadd.f32 %v205_v30, %v201_v31  ;;  %v194_v55 = vadd.f32 %v190_v46, %v186_v49  ;;  %v427_v5 = vld [vmem:[%s1892_s2 + $0x200] sm:$0xff]  ;;  %v439_v9 = vld [vmem:[%s1892_s2 + $0x210] sm:$0xff]  ;;  %v261_v11 = vld [vmem:[%s1891_s1 + $0x68] sm:$0xff] }
   0xf   :  { %v222_v7 = vld [vmem:[%s1891_s1 + $0x140] sm:$0x1]  ;;  %v435_v13 = vadd.f32 %v431_v8, %v427_v5  ;;  %v557_v14 = vld [vmem:[%s1892_s2 + $0x88] sm:$0xff]  ;;  %v447_v17 = vld [vmem:[%s1892_s2 + $0x218] sm:$0xff] }
  0x10   :  { %v489_v28 = vadd.f32 %v485_v22, %v481_v24  ;;  %v217_v45 = vadd.f32 %v213_v36, %v209_v39  ;;  %v202_v61 = vadd.f32 %v198_v52, %v194_v55  ;;  %v230_v16 = vld [vmem:[%s1891_s1 + $0x148] sm:$0x1]  ;;  %v269_v19 = vld [vmem:[%s1891_s1 + $0x70] sm:$0xff]  ;;  %v455_v25 = vld [vmem:[%s1892_s2 + $0x220] sm:$0xff] }
  0x11   :  { %v443_v21 = vadd.f32 %v439_v9, %v435_v13  ;;  %v565_v22 = vld [vmem:[%s1892_s2 + $0x90] sm:$0xff]  ;;  %v277_v27 = vld [vmem:[%s1891_s1 + $0x78] sm:$0xff]  ;;  %v463_v33 = vld [vmem:[%s1892_s2 + $0x228] sm:$0xff] }
  0x12   :  { %v497_v35 = vadd.f32 %v493_v26, %v489_v28  ;;  %v225_v51 = vadd.f32 %v221_v42, %v217_v45  ;;  %v210_v4 = vadd.f32 %v206_v58, %v202_v61  ;;  %v238_v24 = vld [vmem:[%s1891_s1 + $0x150] sm:$0x1]  ;;  %v573_v30 = vld [vmem:[%s1892_s2 + $0x98] sm:$0xff]  ;;  %v254_v40 = vld [vmem:[%s1891_s1 + $0x160] sm:$0x1] }
  0x13   :  { %v246_v32 = vld [vmem:[%s1891_s1 + $0x158] sm:$0x1]  ;;  %v589_v43 = vld [vmem:[%s1892_s2 + $0xa8] sm:$0xff]  ;;  %v301_v52 = vld [vmem:[%s1891_s1 + $0x90] sm:$0xff] }
  0x14   :  { %v505_v41 = vadd.f32 %v501_v29, %v497_v35  ;;  %v233_v57 = vadd.f32 %v229_v48, %v225_v51  ;;  %v218_v12 = vadd.f32 %v214_v0, %v210_v4  ;;  %v451_v29 = vadd.f32 %v447_v17, %v443_v21  ;;  %v285_v35 = vld [vmem:[%s1891_s1 + $0x80] sm:$0xff]  ;;  %v262_v48 = vld [vmem:[%s1891_s1 + $0x168] sm:$0x1]  ;;  %v479_v49 = vld [vmem:[%s1892_s2 + $0x238] sm:$0xff] }
  0x15   :  { %v167_v55 = vld [vmem:[%s1891_s1 + $0x208] sm:$0xff]  ;;  %v278_v5 = vld [vmem:[%s1891_s1 + $0x178] sm:$0x1]  ;;  %v317_v9 = vld [vmem:[%s1891_s1 + $0xa0] sm:$0xff] }
  0x16   :  { %v513_v47 = vadd.f32 %v509_v38, %v505_v41  ;;  %v241_v63 = vadd.f32 %v237_v54, %v233_v57  ;;  %v226_v20 = vadd.f32 %v222_v7, %v218_v12  ;;  %v459_v37 = vadd.f32 %v455_v25, %v451_v29  ;;  %v581_v38 = vld [vmem:[%s1892_s2 + $0xa0] sm:$0xff]  ;;  %v471_v41 = vld [vmem:[%s1892_s2 + $0x230] sm:$0xff]  ;;  %v294_v25 = vld [vmem:[%s1891_s1 + $0x188] sm:$0x1] }
  0x17   :  { %v597_v57 = vld [vmem:[%s1892_s2 + $0xb0] sm:$0xff]  ;;  %v191_v12 = vld [vmem:[%s1891_s1 + $0x220] sm:$0xff] }
  0x18   :  { %v521_v53 = vadd.f32 %v517_v44, %v513_v47  ;;  %v249_v6 = vadd.f32 %v245_v60, %v241_v63  ;;  %v234_v28 = vadd.f32 %v230_v16, %v226_v20  ;;  %v293_v44 = vld [vmem:[%s1891_s1 + $0x88] sm:$0xff]  ;;  %v467_v46 = vadd.f32 %v463_v33, %v459_v37  ;;  %v487_v60 = vld [vmem:[%s1892_s2 + $0x240] sm:$0xff]  ;;  %v309_v63 = vld [vmem:[%s1891_s1 + $0x98] sm:$0xff] }
  0x19   :  { %v613_v13 = vld [vmem:[%s1892_s2 + $0xc0] sm:$0xff]  ;;  %v503_v16 = vld [vmem:[%s1892_s2 + $0x250] sm:$0xff] }
  0x1a   :  { %v529_v59 = vadd.f32 %v525_v50, %v521_v53  ;;  %v257_v15 = vadd.f32 %v253_v3, %v249_v6  ;;  %v242_v36 = vadd.f32 %v238_v24, %v234_v28  ;;  %v163_v50 = vld [vmem:[%s1891_s1 + $0x200] sm:$0xff]  ;;  %v475_v54 = vadd.f32 %v471_v41, %v467_v46  ;;  %v605_v3 = vld [vmem:[%s1892_s2 + $0xb8] sm:$0xff]  ;;  %v495_v6 = vld [vmem:[%s1892_s2 + $0x248] sm:$0xff] }
  0x1b   :  { %v171_v61 = vadd.f32 %v167_v55, %v163_v50  ;;  %v629_v29 = vld [vmem:[%s1892_s2 + $0xd0] sm:$0xff]  ;;  %v645_v46 = vld [vmem:[%s1892_s2 + $0xe0] sm:$0xff] }
  0x1c   :  { %v537_v1 = vadd.f32 %v533_v56, %v529_v59  ;;  %v265_v23 = vadd.f32 %v261_v11, %v257_v15  ;;  %v250_v45 = vadd.f32 %v246_v32, %v242_v36  ;;  %v175_v56 = vld [vmem:[%s1891_s1 + $0x210] sm:$0xff]  ;;  %v286_v15 = vld [vmem:[%s1891_s1 + $0x180] sm:$0x1]  ;;  %v341_v36 = vld [vmem:[%s1891_s1 + $0xb8] sm:$0xff] }
  0x1d   :  { %v270_v59 = vld [vmem:[%s1891_s1 + $0x170] sm:$0x1]  ;;  %v179_v7 = vadd.f32 %v175_v56, %v171_v61  ;;  %v318_v61 = vld [vmem:[%s1891_s1 + $0x1a0] sm:$0x1] }
  0x1e   :  { %v545_v10 = vadd.f32 %v541_v62, %v537_v1  ;;  %v273_v31 = vadd.f32 %v269_v19, %v265_v23  ;;  %v258_v53 = vadd.f32 %v254_v40, %v250_v45  ;;  %v483_v1 = vadd.f32 %v479_v49, %v475_v54  ;;  %v325_v19 = vld [vmem:[%s1891_s1 + $0xa8] sm:$0xff]  ;;  %v207_v33 = vld [vmem:[%s1891_s1 + $0x230] sm:$0xff]  ;;  %v349_v54 = vld [vmem:[%s1891_s1 + $0xc0] sm:$0xff] }
  0x1f   :  { %v621_v23 = vld [vmem:[%s1892_s2 + $0xc8] sm:$0xff]  ;;  %v302_v37 = vld [vmem:[%s1891_s1 + $0x190] sm:$0x1] }
  0x20   :  { %v553_v18 = vadd.f32 %v549_v2, %v545_v10  ;;  %v281_v39 = vadd.f32 %v277_v27, %v273_v31  ;;  %v266_v0 = vadd.f32 %v262_v48, %v258_v53  ;;  %v183_v2 = vld [vmem:[%s1891_s1 + $0x218] sm:$0xff]  ;;  %v491_v11 = vadd.f32 %v487_v60, %v483_v1  ;;  %v168_v45 = vld [vmem:[%s1891_s1 + $0x308] sm:$0x1] }
  0x21   :  { %v187_v17 = vadd.f32 %v183_v2, %v179_v7  ;;  %v310_v48 = vld [vmem:[%s1891_s1 + $0x198] sm:$0x1]  ;;  %v527_v49 = vld [vmem:[%s1892_s2 + $0x268] sm:$0xff]  ;;  %v661_v7 = vld [vmem:[%s1892_s2 + $0xf0] sm:$0xff] }
  0x22   :  { %v561_v26 = vadd.f32 %v557_v14, %v553_v18  ;;  %v289_v47 = vadd.f32 %v285_v35, %v281_v39  ;;  %v274_v10 = vadd.f32 %v270_v59, %v266_v0  ;;  %v499_v21 = vadd.f32 %v495_v6, %v491_v11  ;;  %v653_v59 = vld [vmem:[%s1892_s2 + $0xe8] sm:$0xff]  ;;  %v192_v6 = vld [vmem:[%s1891_s1 + $0x320] sm:$0x1]  ;;  %v543_v11 = vld [vmem:[%s1892_s2 + $0x278] sm:$0xff] }
  0x23   :  { %v195_v27 = vadd.f32 %v191_v12, %v187_v17  ;;  %v357_v2 = vld [vmem:[%s1891_s1 + $0xc8] sm:$0xff] }
  0x24   :  { %v569_v34 = vadd.f32 %v565_v22, %v561_v26  ;;  %v297_v58 = vadd.f32 %v293_v44, %v289_v47  ;;  %v282_v20 = vadd.f32 %v278_v5, %v274_v10  ;;  %v199_v22 = vld [vmem:[%s1891_s1 + $0x228] sm:$0xff]  ;;  %v511_v26 = vld [vmem:[%s1892_s2 + $0x258] sm:$0xff]  ;;  %v507_v32 = vadd.f32 %v503_v16, %v499_v21  ;;  %v164_v44 = vld [vmem:[%s1891_s1 + $0x300] sm:$0x1] }
  0x25   :  { %v203_v39 = vadd.f32 %v199_v22, %v195_v27  ;;  %v231_v5 = vld [vmem:[%s1891_s1 + $0x248] sm:$0xff]  ;;  %v334_v16 = vld [vmem:[%s1891_s1 + $0x1b0] sm:$0x1]  ;;  %v373_v22 = vld [vmem:[%s1891_s1 + $0xd8] sm:$0xff] }
  0x26   :  { %v577_v42 = vadd.f32 %v573_v30, %v569_v34  ;;  %v305_v4 = vadd.f32 %v301_v52, %v297_v58  ;;  %v333_v30 = vld [vmem:[%s1891_s1 + $0xb0] sm:$0xff]  ;;  %v290_v31 = vadd.f32 %v286_v15, %v282_v20  ;;  %v637_v34 = vld [vmem:[%s1892_s2 + $0xd8] sm:$0xff]  ;;  %v326_v10 = vld [vmem:[%s1891_s1 + $0x1a8] sm:$0x1] }
  0x27   :  { %v211_v50 = vadd.f32 %v207_v33, %v203_v39  ;;  %v176_v52 = vld [vmem:[%s1891_s1 + $0x310] sm:$0x1]  ;;  %v184_v58 = vld [vmem:[%s1891_s1 + $0x318] sm:$0x1]  ;;  %v381_v33 = vld [vmem:[%s1891_s1 + $0xe0] sm:$0xff] }
  0x28   :  { %v585_v51 = vadd.f32 %v581_v38, %v577_v42  ;;  %v313_v14 = vadd.f32 %v309_v63, %v305_v4  ;;  %v519_v38 = vld [vmem:[%s1892_s2 + $0x260] sm:$0xff]  ;;  %v298_v41 = vadd.f32 %v294_v25, %v290_v31  ;;  %v515_v42 = vadd.f32 %v511_v26, %v507_v32  ;;  %v669_v20 = vld [vmem:[%s1892_s2 + $0xf8] sm:$0xff]  ;;  %v208_v31 = vld [vmem:[%s1891_s1 + $0x330] sm:$0x1] }
  0x2a   :  { %v593_v62 = vadd.f32 %v589_v43, %v585_v51  ;;  %v321_v24 = vadd.f32 %v317_v9, %v313_v14  ;;  %v215_v43 = vld [vmem:[%s1891_s1 + $0x238] sm:$0xff]  ;;  %v172_v51 = vadd.f32 %v168_v45, %v164_v44  ;;  %v306_v55 = vadd.f32 %v302_v37, %v298_v41  ;;  %v365_v9 = vld [vmem:[%s1891_s1 + $0xd0] sm:$0xff] }
  0x2b   :  { %v523_v56 = vadd.f32 %v519_v38, %v515_v42  ;;  %v219_v63 = vadd.f32 %v215_v43, %v211_v50  ;;  %v567_v41 = vld [vmem:[%s1892_s2 + $0x290] sm:$0xff]  ;;  %v255_v42 = vld [vmem:[%s1891_s1 + $0x260] sm:$0xff]  ;;  %v216_v43 = vld [vmem:[%s1891_s1 + $0x338] sm:$0x1] }
  0x2c   :  { %v601_v8 = vadd.f32 %v597_v57, %v593_v62  ;;  %v329_v35 = vadd.f32 %v325_v19, %v321_v24  ;;  %v223_v57 = vld [vmem:[%s1891_s1 + $0x240] sm:$0xff]  ;;  %v535_v62 = vld [vmem:[%s1892_s2 + $0x270] sm:$0xff]  ;;  %v180_v0 = vadd.f32 %v176_v52, %v172_v51  ;;  %v200_v19 = vld [vmem:[%s1891_s1 + $0x328] sm:$0x1] }
  0x2d   :  { %v531_v4 = vadd.f32 %v527_v49, %v523_v56  ;;  %v227_v12 = vadd.f32 %v223_v57, %v219_v63  ;;  %v438_v49 = vld [vmem:[%s1892_s2 + $0x110] sm:$0x3]  ;;  %v389_v51 = vld [vmem:[%s1891_s1 + $0xe8] sm:$0xff] }
  0x2e   :  { %v609_v18 = vadd.f32 %v605_v3, %v601_v8  ;;  %v337_v47 = vadd.f32 %v333_v30, %v329_v35  ;;  %v314_v3 = vadd.f32 %v310_v48, %v306_v55  ;;  %v247_v30 = vld [vmem:[%s1891_s1 + $0x258] sm:$0xff]  ;;  %v559_v35 = vld [vmem:[%s1892_s2 + $0x288] sm:$0xff]  ;;  %v224_v55 = vld [vmem:[%s1891_s1 + $0x340] sm:$0x1] }
  0x2f   :  { %v539_v17 = vadd.f32 %v535_v62, %v531_v4  ;;  %v235_v24 = vadd.f32 %v231_v5, %v227_v12  ;;  %v430_v48 = vld [vmem:[%s1892_s2 + $0x108] sm:$0x3]  ;;  %v446_v62 = vld [vmem:[%s1892_s2 + $0x118] sm:$0x3]  ;;  %v397_v63 = vld [vmem:[%s1891_s1 + $0xf0] sm:$0xff] }
  0x30   :  { %v617_v28 = vadd.f32 %v613_v13, %v609_v18  ;;  %v345_v60 = vadd.f32 %v341_v36, %v337_v47  ;;  %v188_v13 = vadd.f32 %v184_v58, %v180_v0  ;;  %v322_v15 = vadd.f32 %v318_v61, %v314_v3  ;;  %v239_v18 = vld [vmem:[%s1891_s1 + $0x250] sm:$0xff]  ;;  %v426_v47 = vld [vmem:[%s1892_s2 + $0x100] sm:$0x3]  ;;  %v358_v58 = vld [vmem:[%s1891_s1 + $0x1c8] sm:$0x1] }
  0x31   :  { %v243_v36 = vadd.f32 %v239_v18, %v235_v24  ;;  %v434_v56 = vadd.f32 %v430_v48, %v426_v47  ;;  %v232_v3 = vld [vmem:[%s1891_s1 + $0x348] sm:$0x1]  ;;  %v374_v18 = vld [vmem:[%s1891_s1 + $0x1d8] sm:$0x1]  ;;  %v382_v24 = vld [vmem:[%s1891_s1 + $0x1e0] sm:$0x1] }
  0x32   :  { %v625_v40 = vadd.f32 %v621_v23, %v617_v28  ;;  %v353_v8 = vadd.f32 %v349_v54, %v345_v60  ;;  %v551_v23 = vld [vmem:[%s1892_s2 + $0x280] sm:$0xff]  ;;  %v196_v25 = vadd.f32 %v192_v6, %v188_v13  ;;  %v330_v27 = vadd.f32 %v326_v10, %v322_v15  ;;  %v342_v28 = vld [vmem:[%s1891_s1 + $0x1b8] sm:$0x1]  ;;  %v263_v54 = vld [vmem:[%s1891_s1 + $0x268] sm:$0xff] }
  0x33   :  { %v251_v45 = vadd.f32 %v247_v30, %v243_v36  ;;  %v442_v4 = vadd.f32 %v438_v49, %v434_v56  ;;  %v366_v6 = vld [vmem:[%s1891_s1 + $0x1d0] sm:$0x1]  ;;  %v454_v10 = vld [vmem:[%s1892_s2 + $0x120] sm:$0x3]  ;;  %v390_v30 = vld [vmem:[%s1891_s1 + $0x1e8] sm:$0x1] }
  0x34   :  { %v633_v53 = vadd.f32 %v629_v29, %v625_v40  ;;  %v361_v21 = vadd.f32 %v357_v2, %v353_v8  ;;  %v547_v29 = vadd.f32 %v543_v11, %v539_v17  ;;  %v204_v37 = vadd.f32 %v200_v19, %v196_v25  ;;  %v271_v2 = vld [vmem:[%s1891_s1 + $0x270] sm:$0xff]  ;;  %v405_v11 = vld [vmem:[%s1891_s1 + $0xf8] sm:$0xff]  ;;  %v591_v19 = vld [vmem:[%s1892_s2 + $0x2a8] sm:$0xff] }
  0x35   :  { %v338_v39 = vadd.f32 %v334_v16, %v330_v27  ;;  %v259_v60 = vadd.f32 %v255_v42, %v251_v45  ;;  %v240_v15 = vld [vmem:[%s1891_s1 + $0x350] sm:$0x1]  ;;  %v450_v16 = vadd.f32 %v446_v62, %v442_v4  ;;  %v248_v27 = vld [vmem:[%s1891_s1 + $0x358] sm:$0x1]  ;;  %v264_v48 = vld [vmem:[%s1891_s1 + $0x368] sm:$0x1] }
  0x36   :  { %v641_v1 = vadd.f32 %v637_v34, %v633_v53  ;;  %v369_v32 = vadd.f32 %v365_v9, %v361_v21  ;;  %v350_v34 = vld [vmem:[%s1891_s1 + $0x1c0] sm:$0x1]  ;;  %v555_v40 = vadd.f32 %v551_v23, %v547_v29  ;;  %v478_v45 = vld [vmem:[%s1892_s2 + $0x138] sm:$0x3]  ;;  %v440_v62 = vld [vmem:[%s1892_s2 + $0x310] sm:$0x3] }
  0x37   :  { %v346_v52 = vadd.f32 %v342_v28, %v338_v39  ;;  %v267_v8 = vadd.f32 %v263_v54, %v259_v60  ;;  %v458_v28 = vadd.f32 %v454_v10, %v450_v16  ;;  %v256_v39 = vld [vmem:[%s1891_s1 + $0x360] sm:$0x1]  ;;  %v311_v54 = vld [vmem:[%s1891_s1 + $0x298] sm:$0xff]  ;;  %v272_v60 = vld [vmem:[%s1891_s1 + $0x370] sm:$0x1] }
  0x38   :  { %v649_v14 = vadd.f32 %v645_v46, %v641_v1  ;;  %v377_v44 = vadd.f32 %v373_v22, %v369_v32  ;;  %v212_v46 = vadd.f32 %v208_v31, %v204_v37  ;;  %v563_v53 = vadd.f32 %v559_v35, %v555_v40  ;;  %v462_v22 = vld [vmem:[%s1892_s2 + $0x128] sm:$0x3]  ;;  %v599_v31 = vld [vmem:[%s1892_s2 + $0x2b0] sm:$0xff]  ;;  %v607_v37 = vld [vmem:[%s1892_s2 + $0x2b8] sm:$0xff] }
  0x39   :  { %v354_v0 = vadd.f32 %v350_v34, %v346_v52  ;;  %v470_v34 = vld [vmem:[%s1892_s2 + $0x130] sm:$0x3]  ;;  %v466_v40 = vadd.f32 %v462_v22, %v458_v28  ;;  %v615_v52 = vld [vmem:[%s1892_s2 + $0x2c0] sm:$0xff]  ;;  %v494_v4 = vld [vmem:[%s1892_s2 + $0x148] sm:$0x3] }
  0x3a   :  { %v657_v26 = vadd.f32 %v653_v59, %v649_v14  ;;  %v385_v57 = vadd.f32 %v381_v33, %v377_v44  ;;  %v575_v59 = vld [vmem:[%s1892_s2 + $0x298] sm:$0xff]  ;;  %v220_v61 = vadd.f32 %v216_v43, %v212_v46  ;;  %v571_v1 = vadd.f32 %v567_v41, %v563_v53  ;;  %v398_v41 = vld [vmem:[%s1891_s1 + $0x1f0] sm:$0x1]  ;;  %v486_v56 = vld [vmem:[%s1892_s2 + $0x140] sm:$0x3] }
  0x3b   :  { %v362_v12 = vadd.f32 %v358_v58, %v354_v0  ;;  %v279_v14 = vld [vmem:[%s1891_s1 + $0x278] sm:$0xff]  ;;  %v303_v43 = vld [vmem:[%s1891_s1 + $0x290] sm:$0xff]  ;;  %v474_v49 = vadd.f32 %v470_v34, %v466_v40 }
  0x3c   :  { %v665_v38 = vadd.f32 %v661_v7, %v657_v26  ;;  %v393_v5 = vadd.f32 %v389_v51, %v385_v57  ;;  %v583_v7 = vld [vmem:[%s1892_s2 + $0x2a0] sm:$0xff]  ;;  %v228_v9 = vadd.f32 %v224_v55, %v220_v61  ;;  %v579_v13 = vadd.f32 %v575_v59, %v571_v1  ;;  %v432_v51 = vld [vmem:[%s1892_s2 + $0x308] sm:$0x3]  ;;  %v406_v0 = vld [vmem:[%s1891_s1 + $0x1f8] sm:$0x1] }
  0x3d   :  { %v370_v23 = vadd.f32 %v366_v6, %v362_v12  ;;  %v287_v26 = vld [vmem:[%s1891_s1 + $0x280] sm:$0xff]  ;;  %v482_v61 = vadd.f32 %v478_v45, %v474_v49  ;;  %v623_v1 = vld [vmem:[%s1892_s2 + $0x2c8] sm:$0xff]  ;;  %v502_v16 = vld [vmem:[%s1892_s2 + $0x150] sm:$0x3] }
  0x3e   :  { %v673_v50 = vadd.f32 %v669_v20, %v665_v38  ;;  %v401_v17 = vadd.f32 %v397_v63, %v393_v5  ;;  %v275_v20 = vadd.f32 %v271_v2, %v267_v8  ;;  %v236_v21 = vadd.f32 %v232_v3, %v228_v9  ;;  %v295_v38 = vld [vmem:[%s1891_s1 + $0x288] sm:$0xff]  ;;  %v448_v63 = vld [vmem:[%s1892_s2 + $0x318] sm:$0x3]  ;;  %v319_v8 = vld [vmem:[%s1891_s1 + $0x2a0] sm:$0xff] }
  0x3f   :  { %v587_v25 = vadd.f32 %v583_v7, %v579_v13  ;;  %v378_v35 = vadd.f32 %v374_v18, %v370_v23  ;;  %v280_v9 = vld [vmem:[%s1891_s1 + $0x378] sm:$0x1]  ;;  %v490_v10 = vadd.f32 %v486_v56, %v482_v61  ;;  %v414_v12 = vld [vmem:[#allocation3] sm:$0x1]  ;;  %v631_v13 = vld [vmem:[%s1892_s2 + $0x2d0] sm:$0xff] }
  0x40   :  { %753 = vadd.xlane.f32.xlu0 %v673_v50  ;;  %v409_v29 = vadd.f32 %v405_v11, %v401_v17  ;;  %v283_v32 = vadd.f32 %v279_v14, %v275_v20  ;;  %v244_v33 = vadd.f32 %v240_v15, %v236_v21  ;;  %v428_v50 = vld [vmem:[%s1892_s2 + $0x300] sm:$0x3]  ;;  %v327_v20 = vld [vmem:[%s1891_s1 + $0x2a8] sm:$0xff]  ;;  %v472_v34 = vld [vmem:[%s1892_s2 + $0x330] sm:$0x3] }
  0x41   :  { %v595_v36 = vadd.f32 %v591_v19, %v587_v25  ;;  %v386_v46 = vadd.f32 %v382_v24, %v378_v35  ;;  %v436_v57 = vadd.f32 %v432_v51, %v428_v50  ;;  %v456_v11 = vld [vmem:[%s1892_s2 + $0x320] sm:$0x3]  ;;  %v498_v22 = vadd.f32 %v494_v4, %v490_v10  ;;  %v464_v23 = vld [vmem:[%s1892_s2 + $0x328] sm:$0x3]  ;;  %v639_v24 = vld [vmem:[%s1892_s2 + $0x2d8] sm:$0xff] }
  0x42   :  { %v291_v42 = vadd.f32 %v287_v26, %v283_v32  ;;  %v252_v44 = vadd.f32 %v248_v27, %v244_v33  ;;  %709 = vadd.xlane.f32.xlu1 %v409_v29  ;;  %v288_v21 = vld [vmem:[%s1891_s1 + $0x380] sm:$0x1]  ;;  %v510_v27 = vld [vmem:[%s1892_s2 + $0x158] sm:$0x3]  ;;  %v296_v32 = vld [vmem:[%s1891_s1 + $0x388] sm:$0x1] }
  0x43   :  { %v603_v47 = vadd.f32 %v599_v31, %v595_v36  ;;  %v394_v58 = vadd.f32 %v390_v30, %v386_v46  ;;  %v444_v5 = vadd.f32 %v440_v62, %v436_v57  ;;  %v335_v31 = vld [vmem:[%s1891_s1 + $0x2b0] sm:$0xff]  ;;  %v506_v33 = vadd.f32 %v502_v16, %v498_v22  ;;  %v647_v35 = vld [vmem:[%s1892_s2 + $0x2e0] sm:$0xff]  ;;  %v655_v45 = vld [vmem:[%s1892_s2 + $0x2e8] sm:$0xff] }
  0x44   :  { %v299_v53 = vadd.f32 %v295_v38, %v291_v42  ;;  %v260_v55 = vadd.f32 %v256_v39, %v252_v44  ;;  %v518_v39 = vld [vmem:[%s1892_s2 + $0x160] sm:$0x3]  ;;  %v304_v42 = vld [vmem:[%s1891_s1 + $0x390] sm:$0x1]  ;;  %v480_v44 = vld [vmem:[%s1892_s2 + $0x338] sm:$0x3] }
  0x45   :  { %v611_v59 = vadd.f32 %v607_v37, %v603_v47  ;;  %v402_v6 = vadd.f32 %v398_v41, %v394_v58  ;;  %v452_v17 = vadd.f32 %v448_v63, %v444_v5  ;;  %v343_v37 = vld [vmem:[%s1891_s1 + $0x2b8] sm:$0xff]  ;;  %v351_v47 = vld [vmem:[%s1891_s1 + $0x2c0] sm:$0xff]  ;;  %v526_v49 = vld [vmem:[%s1892_s2 + $0x168] sm:$0x3] }
  0x46   :  { %v307_v2 = vadd.f32 %v303_v43, %v299_v53  ;;  %v268_v3 = vadd.f32 %v264_v48, %v260_v55  ;;  %v514_v43 = vadd.f32 %v510_v27, %v506_v33 }
  0x47   :  { %v619_v7 = vadd.f32 %v615_v52, %v611_v59  ;;  %v410_v18 = vadd.f32 %v406_v0, %v402_v6  ;;  %v460_v28 = vadd.f32 %v456_v11, %v452_v17  ;;  %v312_v52 = vld [vmem:[%s1891_s1 + $0x398] sm:$0x1] }
  0x48   :  { %v315_v14 = vadd.f32 %v311_v54, %v307_v2  ;;  %v276_v15 = vadd.f32 %v272_v60, %v268_v3  ;;  %v522_v53 = vadd.f32 %v518_v39, %v514_v43  ;;  %v488_v54 = vld [vmem:[%s1892_s2 + $0x340] sm:$0x3] }
  0x49   :  { %v627_v19 = vadd.f32 %v623_v1, %v619_v7  ;;  %v418_v29 = vadd.f32 %v414_v12, %v410_v18  ;;  %v468_v40 = vadd.f32 %v464_v23, %v460_v28 }
  0x4a   :  { %v323_v25 = vadd.f32 %v319_v8, %v315_v14  ;;  %v284_v26 = vadd.f32 %v280_v9, %v276_v15 }
  0x4b   :  { %v635_v30 = vadd.f32 %v631_v13, %v627_v19  ;;  %422 = vst [vmem:[#allocation3] sm:$0x1] %v418_v29  ;;  %v476_v50 = vadd.f32 %v472_v34, %v468_v40 }
  0x4c   :  { %v331_v36 = vadd.f32 %v327_v20, %v323_v25  ;;  %v292_v38 = vadd.f32 %v288_v21, %v284_v26 }
  0x4d   :  { %v643_v41 = vadd.f32 %v639_v24, %v635_v30 }
  0x4e   :  { %v339_v46 = vadd.f32 %v335_v31, %v331_v36  ;;  %v300_v48 = vadd.f32 %v296_v32, %v292_v38 }
  0x4f   :  { %v651_v51 = vadd.f32 %v647_v35, %v643_v41 }
  0x50   :  { %8 = vsyncpa [#allocation6], 0  ;;  %v663_v55 = vld [vmem:[%s1892_s2 + $0x2f0] sm:$0xff]  ;;  %v347_v56 = vadd.f32 %v343_v37, %v339_v46  ;;  %v308_v57 = vadd.f32 %v304_v42, %v300_v48  ;;  %v484_v59 = vadd.f32 %v480_v44, %v476_v50  ;;  %v359_v61 = vld [vmem:[%s1891_s1 + $0x2c8] sm:$0xff]  ;;  %v530_v63 = vadd.f32 %v526_v49, %v522_v53  ;;  %s853_s24 = sshll.u32 %s1893_s3, 4  ;;  %s854_s24 = int_to_ptr.hbm [resolvable:$true] %s853_s24 }
  0x51   :  { %v534_v58 = vld [vmem:[%s1892_s2 + $0x170] sm:$0x3]  ;;  %v659_v60 = vadd.f32 %v655_v45, %v651_v51  ;;  %v320_v62 = vld [vmem:[%s1891_s1 + $0x3a0] sm:$0x1]  ;;  %v496_v0 = vld [vmem:[%s1892_s2 + $0x348] sm:$0x3] }
  0x52   :  { %vm711_vm0 = vcmask 1040384   ;;  %v671_v1 = vld [vmem:[%s1892_s2 + $0x2f8] sm:$0xff]  ;;  %v355_v2 = vadd.f32 %v351_v47, %v347_v56  ;;  %v316_v3 = vadd.f32 %v312_v52, %v308_v57  ;;  %v492_v5 = vadd.f32 %v488_v54, %v484_v59  ;;  %v367_v7 = vld [vmem:[%s1891_s1 + $0x2d0] sm:$0xff]  ;;  %v328_v8 = vld [vmem:[%s1891_s1 + $0x3a8] sm:$0x1] }
  0x53   :  { %v542_v4 = vld [vmem:[%s1892_s2 + $0x178] sm:$0x3]  ;;  %v667_v6 = vadd.f32 %v663_v55, %v659_v60  ;;  %v538_v9 = vadd.f32 %v534_v58, %v530_v63  ;;  %v504_v10 = vld [vmem:[%s1892_s2 + $0x350] sm:$0x3]  ;;  %v706_v11 = vld [vmem:[#allocation3] sm:$0x1] }
  0x54   :  { %v363_v12 = vadd.f32 %v359_v61, %v355_v2  ;;  %v324_v13 = vadd.f32 %v320_v62, %v316_v3  ;;  %v550_v14 = vld [vmem:[%s1892_s2 + $0x180] sm:$0x3]  ;;  %v500_v15 = vadd.f32 %v496_v0, %v492_v5  ;;  %v712_v16 = vsel %vm711_vm0, %v706_v11, 0.0  ;;  %v375_v18 = vld [vmem:[%s1891_s1 + $0x2d8] sm:$0xff]  ;;  %v336_v19 = vld [vmem:[%s1891_s1 + $0x3b0] sm:$0x1] }
  0x55   :  { %v675_v17 = vadd.f32 %v671_v1, %v667_v6  ;;  %v546_v20 = vadd.f32 %v542_v4, %v538_v9  ;;  %v512_v21 = vld [vmem:[%s1892_s2 + $0x358] sm:$0x3]  ;;  %713 = vadd.xlane.f32.xlu2 %v712_v16  ;;  %v558_v24 = vld [vmem:[%s1892_s2 + $0x188] sm:$0x3]  ;;  %v383_v26 = vld [vmem:[%s1891_s1 + $0x2e0] sm:$0xff]  ;;  %vm738_vm1 = vcmask 1041408  }
  0x56   :  { %v371_v22 = vadd.f32 %v367_v7, %v363_v12  ;;  %v332_v23 = vadd.f32 %v328_v8, %v324_v13  ;;  %v508_v25 = vadd.f32 %v504_v10, %v500_v15  ;;  %v344_v27 = vld [vmem:[%s1891_s1 + $0x3b8] sm:$0x1]  ;;  %v520_v29 = vld [vmem:[%s1892_s2 + $0x360] sm:$0x3]  ;;  %v566_v32 = vld [vmem:[%s1892_s2 + $0x190] sm:$0x3] }
  0x57   :  { %v554_v28 = vadd.f32 %v550_v14, %v546_v20  ;;  %758 = vadd.xlane.f32.xlu0 %v675_v17  ;;  %v391_v34 = vld [vmem:[%s1891_s1 + $0x2e8] sm:$0xff]  ;;  %v352_v35 = vld [vmem:[%s1891_s1 + $0x3c0] sm:$0x1]  ;;  %v574_v40 = vld [vmem:[%s1892_s2 + $0x198] sm:$0x3]  ;;  %vm694_vm2 = vcmask 1043456  }
  0x58   :  { %v379_v30 = vadd.f32 %v375_v18, %v371_v22  ;;  %v340_v31 = vadd.f32 %v336_v19, %v332_v23  ;;  %v516_v33 = vadd.f32 %v512_v21, %v508_v25  ;;  %v528_v37 = vld [vmem:[%s1892_s2 + $0x368] sm:$0x3]  ;;  %v399_v42 = vld [vmem:[%s1891_s1 + $0x2f0] sm:$0xff]  ;;  %v582_v48 = vld [vmem:[%s1892_s2 + $0x1a0] sm:$0x3]  ;;  %vm799_vm3 = vcmask 1041409  }
  0x59   :  { %v562_v36 = vadd.f32 %v558_v24, %v554_v28  ;;  %v360_v43 = vld [vmem:[%s1891_s1 + $0x3c8] sm:$0x1]  ;;  %v536_v45 = vld [vmem:[%s1892_s2 + $0x370] sm:$0x3]  ;;  %v407_v50 = vld [vmem:[%s1891_s1 + $0x2f8] sm:$0xff]  ;;  %vm828_vm4 = vcmask 31744  }
  0x5a   :  { %v387_v38 = vadd.f32 %v383_v26, %v379_v30  ;;  %v348_v39 = vadd.f32 %v344_v27, %v340_v31  ;;  %v524_v41 = vadd.f32 %v520_v29, %v516_v33  ;;  %v368_v51 = vld [vmem:[%s1891_s1 + $0x3d0] sm:$0x1]  ;;  %v544_v53 = vld [vmem:[%s1892_s2 + $0x378] sm:$0x3]  ;;  %v590_v56 = vld [vmem:[%s1892_s2 + $0x1a8] sm:$0x3] }
  0x5b   :  { %v570_v44 = vadd.f32 %v566_v32, %v562_v36  ;;  %v376_v58 = vld [vmem:[%s1891_s1 + $0x3d8] sm:$0x1]  ;;  %v552_v60 = vld [vmem:[%s1892_s2 + $0x380] sm:$0x3]  ;;  %v598_v63 = vld [vmem:[%s1892_s2 + $0x1b0] sm:$0x3] }
  0x5c   :  { %v395_v46 = vadd.f32 %v391_v34, %v387_v38  ;;  %v356_v47 = vadd.f32 %v352_v35, %v348_v39  ;;  %v532_v49 = vadd.f32 %v528_v37, %v524_v41  ;;  %v384_v1 = vld [vmem:[%s1891_s1 + $0x3e0] sm:$0x1]  ;;  %v560_v3 = vld [vmem:[%s1892_s2 + $0x388] sm:$0x3]  ;;  %v606_v5 = vld [vmem:[%s1892_s2 + $0x1b8] sm:$0x3] }
  0x5d   :  { %v578_v52 = vadd.f32 %v574_v40, %v570_v44  ;;  %v392_v7 = vld [vmem:[%s1891_s1 + $0x3e8] sm:$0x1]  ;;  %v568_v9 = vld [vmem:[%s1892_s2 + $0x390] sm:$0x3]  ;;  %v614_v11 = vld [vmem:[%s1892_s2 + $0x1c0] sm:$0x3] }
  0x5e   :  { %v403_v54 = vadd.f32 %v399_v42, %v395_v46  ;;  %v364_v55 = vadd.f32 %v360_v43, %v356_v47  ;;  %v540_v57 = vadd.f32 %v536_v45, %v532_v49  ;;  %v400_v13 = vld [vmem:[%s1891_s1 + $0x3f0] sm:$0x1]  ;;  %v576_v15 = vld [vmem:[%s1892_s2 + $0x398] sm:$0x3]  ;;  %v622_v17 = vld [vmem:[%s1892_s2 + $0x1c8] sm:$0x3] }
  0x5f   :  { %v586_v59 = vadd.f32 %v582_v48, %v578_v52  ;;  %v408_v19 = vld [vmem:[%s1891_s1 + $0x3f8] sm:$0x1]  ;;  %v584_v21 = vld [vmem:[%s1892_s2 + $0x3a0] sm:$0x3]  ;;  %v630_v23 = vld [vmem:[%s1892_s2 + $0x1d0] sm:$0x3] }
  0x60   :  { %v411_v61 = vadd.f32 %v407_v50, %v403_v54  ;;  %v372_v62 = vadd.f32 %v368_v51, %v364_v55  ;;  %v548_v0 = vadd.f32 %v544_v53, %v540_v57  ;;  %v416_v25 = vld [vmem:[#allocation3 + $0x8] sm:$0x1]  ;;  %v592_v27 = vld [vmem:[%s1892_s2 + $0x3a8] sm:$0x3]  ;;  %v638_v29 = vld [vmem:[%s1892_s2 + $0x1d8] sm:$0x3] }
  0x61   :  { %v594_v2 = vadd.f32 %v590_v56, %v586_v59  ;;  %v600_v32 = vld [vmem:[%s1892_s2 + $0x3b0] sm:$0x3]  ;;  %v646_v34 = vld [vmem:[%s1892_s2 + $0x1e0] sm:$0x3]  ;;  %v608_v36 = vld [vmem:[%s1892_s2 + $0x3b8] sm:$0x3] }
  0x62   :  { %v380_v4 = vadd.f32 %v376_v58, %v372_v62  ;;  %v556_v6 = vadd.f32 %v552_v60, %v548_v0  ;;  %715 = vadd.xlane.f32.xlu1 %v411_v61  ;;  %v29_v38 = vld [vmem:[%s1890_s0] sm:$0xf]  ;;  %v31_v39 = vld [vmem:[%s1890_s0 + $0x4] sm:$0xf]  ;;  %v35_v40 = vld [vmem:[%s1890_s0 + $0x8] sm:$0xf] }
  0x63   :  { %v602_v8 = vadd.f32 %v598_v63, %v594_v2  ;;  %v654_v41 = vld [vmem:[%s1892_s2 + $0x1e8] sm:$0x3]  ;;  %v33_v43 = vadd.f32 %v31_v39, %v29_v38  ;;  %v616_v45 = vld [vmem:[%s1892_s2 + $0x3c0] sm:$0x3]  ;;  %v39_v46 = vld [vmem:[%s1890_s0 + $0xc] sm:$0xf] }
  0x64   :  { %v388_v10 = vadd.f32 %v384_v1, %v380_v4  ;;  %v564_v12 = vadd.f32 %v560_v3, %v556_v6  ;;  %v662_v47 = vld [vmem:[%s1892_s2 + $0x1f0] sm:$0x3]  ;;  %v624_v51 = vld [vmem:[%s1892_s2 + $0x3c8] sm:$0x3]  ;;  %v670_v53 = vld [vmem:[%s1892_s2 + $0x1f8] sm:$0x3] }
  0x65   :  { %v610_v14 = vadd.f32 %v606_v5, %v602_v8  ;;  %v37_v49 = vadd.f32 %v35_v40, %v33_v43  ;;  %v43_v52 = vld [vmem:[%s1890_s0 + $0x10] sm:$0xf]  ;;  %v47_v58 = vld [vmem:[%s1890_s0 + $0x14] sm:$0xf]  ;;  %v678_v59 = vld [vmem:[#allocation4 + $0x18] sm:$0x3] }
  0x66   :  { %v396_v16 = vadd.f32 %v392_v7, %v388_v10  ;;  %v572_v18 = vadd.f32 %v568_v9, %v564_v12  ;;  %v632_v57 = vld [vmem:[%s1892_s2 + $0x3d0] sm:$0x3]  ;;  %v640_v0 = vld [vmem:[%s1892_s2 + $0x3d8] sm:$0x3]  ;;  %v648_v6 = vld [vmem:[%s1892_s2 + $0x3e0] sm:$0x3] }
  0x67   :  { %v618_v20 = vadd.f32 %v614_v11, %v610_v14  ;;  %v41_v55 = vadd.f32 %v39_v46, %v37_v49  ;;  %v51_v1 = vld [vmem:[%s1890_s0 + $0x18] sm:$0xf]  ;;  %v55_v7 = vld [vmem:[%s1890_s0 + $0x1c] sm:$0xf]  ;;  %v656_v10 = vld [vmem:[%s1892_s2 + $0x3e8] sm:$0x3] }
  0x68   :  { %v404_v22 = vadd.f32 %v400_v13, %v396_v16  ;;  %v580_v24 = vadd.f32 %v576_v15, %v572_v18  ;;  %v59_v11 = vld [vmem:[%s1890_s0 + $0x20] sm:$0xf]  ;;  %v664_v14 = vld [vmem:[%s1892_s2 + $0x3f0] sm:$0x3]  ;;  %v63_v15 = vld [vmem:[%s1890_s0 + $0x24] sm:$0xf] }
  0x69   :  { %v626_v26 = vadd.f32 %v622_v17, %v618_v20  ;;  %v45_v61 = vadd.f32 %v43_v52, %v41_v55  ;;  %v672_v18 = vld [vmem:[%s1892_s2 + $0x3f8] sm:$0x3]  ;;  %v30_v38 = vld [vmem:[%s1890_s0 + $0x80] sm:$0xf]  ;;  %v32_v39 = vld [vmem:[%s1890_s0 + $0x84] sm:$0xf] }
  0x6a   :  { %v412_v28 = vadd.f32 %v408_v19, %v404_v22  ;;  %v588_v30 = vadd.f32 %v584_v21, %v580_v24  ;;  %v67_v19 = vld [vmem:[%s1890_s0 + $0x28] sm:$0xf]  ;;  %v680_v22 = vld [vmem:[#allocation4 + $0x10] sm:$0x3]  ;;  %v95_v43 = vld [vmem:[%s1890_s0 + $0x44] sm:$0xf] }
  0x6b   :  { %v634_v31 = vadd.f32 %v630_v23, %v626_v26  ;;  %v49_v4 = vadd.f32 %v47_v58, %v45_v61  ;;  %v71_v23 = vld [vmem:[%s1890_s0 + $0x2c] sm:$0xf]  ;;  %v52_v61 = vld [vmem:[%s1890_s0 + $0x98] sm:$0xf]  ;;  %vm830_vm5 = vcmask 56320   ;;  %vm844_vm7 = vcmask 66560  }
  0x6c   :  { %v420_v33 = vadd.f32 %v416_v25, %v412_v28  ;;  %v596_v35 = vadd.f32 %v592_v27, %v588_v30  ;;  %v75_v28 = vld [vmem:[%s1890_s0 + $0x30] sm:$0xf]  ;;  %v40_v49 = vld [vmem:[%s1890_s0 + $0x8c] sm:$0xf] }
  0x6d   :  { %v642_v37 = vadd.f32 %v638_v29, %v634_v31  ;;  %v53_v9 = vadd.f32 %v51_v1, %v49_v4  ;;  %v79_v31 = vld [vmem:[%s1890_s0 + $0x34] sm:$0xf]  ;;  %v103_v52 = vld [vmem:[%s1890_s0 + $0x4c] sm:$0xf]  ;;  %v56_v1 = vld [vmem:[%s1890_s0 + $0x9c] sm:$0xf] }
  0x6e   :  { %424 = vst [vmem:[#allocation3 + $0x8] sm:$0x1] %v420_v33  ;;  %v604_v42 = vadd.f32 %v600_v32, %v596_v35  ;;  %v83_v33 = vld [vmem:[%s1890_s0 + $0x38] sm:$0xf]  ;;  %v87_v35 = vld [vmem:[%s1890_s0 + $0x3c] sm:$0xf] }
  0x6f   :  { %v650_v44 = vadd.f32 %v646_v34, %v642_v37  ;;  %v57_v13 = vadd.f32 %v55_v7, %v53_v9  ;;  %v91_v37 = vld [vmem:[%s1890_s0 + $0x40] sm:$0xf]  ;;  %v119_v4 = vld [vmem:[%s1890_s0 + $0x5c] sm:$0xf]  ;;  %v64_v9 = vld [vmem:[%s1890_s0 + $0xa4] sm:$0xf] }
  0x70   :  { %v612_v48 = vadd.f32 %v608_v36, %v604_v42 }
  0x71   :  { %v658_v50 = vadd.f32 %v654_v41, %v650_v44  ;;  %v61_v17 = vadd.f32 %v59_v11, %v57_v13  ;;  %v34_v41 = vadd.f32 %v32_v39, %v30_v38  ;;  %v36_v44 = vld [vmem:[%s1890_s0 + $0x88] sm:$0xf] }
  0x72   :  { %v620_v54 = vadd.f32 %v616_v45, %v612_v48  ;;  %v99_v48 = vld [vmem:[%s1890_s0 + $0x48] sm:$0xf] }
  0x73   :  { %v666_v56 = vadd.f32 %v662_v47, %v658_v50  ;;  %v65_v21 = vadd.f32 %v63_v15, %v61_v17  ;;  %v38_v47 = vadd.f32 %v36_v44, %v34_v41  ;;  %v68_v13 = vld [vmem:[%s1890_s0 + $0xa8] sm:$0xf]  ;;  %v72_v17 = vld [vmem:[%s1890_s0 + $0xac] sm:$0xf]  ;;  %v96_v41 = vld [vmem:[%s1890_s0 + $0xc4] sm:$0xf] }
  0x74   :  { %v628_v60 = vadd.f32 %v624_v51, %v620_v54  ;;  %v100_v44 = vld [vmem:[%s1890_s0 + $0xc8] sm:$0xf] }
  0x75   :  { %v708_v62 = vld [vmem:[#allocation3 + $0x8] sm:$0x1]  ;;  %v674_v63 = vadd.f32 %v670_v53, %v666_v56  ;;  %v69_v26 = vadd.f32 %v67_v19, %v65_v21  ;;  %v42_v51 = vadd.f32 %v40_v49, %v38_v47  ;;  %v104_v47 = vld [vmem:[%s1890_s0 + $0xcc] sm:$0xf] }
  0x76   :  { %v717_v2 = vsel %vm711_vm0, %v708_v62, 0.0  ;;  %v636_v3 = vadd.f32 %v632_v57, %v628_v60  ;;  %v44_v53 = vld [vmem:[%s1890_s0 + $0x90] sm:$0xf]  ;;  %v48_v57 = vld [vmem:[%s1890_s0 + $0x94] sm:$0xf] }
  0x77   :  { %718 = vadd.xlane.f32.xlu2 %v717_v2  ;;  %v682_v5 = vadd.f32 %v678_v59, %v674_v63  ;;  %v73_v30 = vadd.f32 %v71_v23, %v69_v26  ;;  %v46_v55 = vadd.f32 %v44_v53, %v42_v51  ;;  %v107_v56 = vld [vmem:[%s1890_s0 + $0x50] sm:$0xf]  ;;  %v111_v60 = vld [vmem:[%s1890_s0 + $0x54] sm:$0xf] }
  0x78   :  { %v644_v8 = vadd.f32 %v640_v0, %v636_v3  ;;  %v115_v0 = vld [vmem:[%s1890_s0 + $0x58] sm:$0xf]  ;;  %v76_v21 = vld [vmem:[%s1890_s0 + $0xb0] sm:$0xf] }
  0x79   :  { %686 = vst [vmem:[#allocation4 + $0x18] sm:$0x3] %v682_v5  ;;  %v77_v32 = vadd.f32 %v75_v28, %v73_v30  ;;  %v50_v59 = vadd.f32 %v48_v57, %v46_v55  ;;  %v60_v5 = vld [vmem:[%s1890_s0 + $0xa0] sm:$0xf]  ;;  %v143_v28 = vld [vmem:[%s1890_s0 + $0x74] sm:$0xf] }
  0x7a   :  { %v652_v12 = vadd.f32 %v648_v6, %v644_v8  ;;  %v123_v8 = vld [vmem:[%s1890_s0 + $0x60] sm:$0xf]  ;;  %v108_v49 = vld [vmem:[%s1890_s0 + $0xd0] sm:$0xf] }
  0x7b   :  { %v81_v34 = vadd.f32 %v79_v31, %v77_v32  ;;  %v54_v63 = vadd.f32 %v52_v61, %v50_v59  ;;  %v147_v32 = vld [vmem:[%s1890_s0 + $0x78] sm:$0xf]  ;;  %v124_v57 = vld [vmem:[%s1890_s0 + $0xe0] sm:$0xf] }
  0x7c   :  { %v660_v16 = vadd.f32 %v656_v10, %v652_v12  ;;  %v127_v12 = vld [vmem:[%s1890_s0 + $0x64] sm:$0xf] }
  0x7d   :  { %v85_v36 = vadd.f32 %v83_v33, %v81_v34  ;;  %v58_v3 = vadd.f32 %v56_v1, %v54_v63  ;;  %v88_v33 = vld [vmem:[%s1890_s0 + $0xbc] sm:$0xf] }
  0x7e   :  { %v668_v20 = vadd.f32 %v664_v14, %v660_v16  ;;  %v131_v16 = vld [vmem:[%s1890_s0 + $0x68] sm:$0xf] }
  0x7f   :  { %v89_v40 = vadd.f32 %v87_v35, %v85_v36  ;;  %v62_v7 = vadd.f32 %v60_v5, %v58_v3  ;;  %v151_v36 = vld [vmem:[%s1890_s0 + $0x7c] sm:$0xf] }
  0x80   :  { %v750_v24 = vld [vmem:[#allocation4 + $0x18] sm:$0x3]  ;;  %v676_v25 = vadd.f32 %v672_v18, %v668_v20  ;;  %v135_v20 = vld [vmem:[%s1890_s0 + $0x6c] sm:$0xf] }
  0x81   :  { %v755_v27 = vsel %vm738_vm1, %v750_v24, 0.0  ;;  %v93_v46 = vadd.f32 %v91_v37, %v89_v40  ;;  %v66_v11 = vadd.f32 %v64_v9, %v62_v7  ;;  %v139_v24 = vld [vmem:[%s1890_s0 + $0x70] sm:$0xf]  ;;  %v92_v37 = vld [vmem:[%s1890_s0 + $0xc0] sm:$0xf] }
  0x82   :  { %756 = vadd.xlane.f32.xlu0 %v755_v27  ;;  %v684_v29 = vadd.f32 %v680_v22, %v676_v25  ;;  %v80_v25 = vld [vmem:[%s1890_s0 + $0xb4] sm:$0xf]  ;;  %v155_v40 = vld [vmem:[#allocation2] sm:$0xf] }
  0x83   :  { %v97_v50 = vadd.f32 %v95_v43, %v93_v46  ;;  %v70_v15 = vadd.f32 %v68_v13, %v66_v11  ;;  %v156_v13 = vld [vmem:[#allocation2 + $0x4] sm:$0xf] }
  0x84   :  { %688 = vst [vmem:[#allocation4 + $0x10] sm:$0x3] %v684_v29  ;;  %v84_v29 = vld [vmem:[%s1890_s0 + $0xb8] sm:$0xf] }
  0x85   :  { %v101_v54 = vadd.f32 %v99_v48, %v97_v50  ;;  %v74_v19 = vadd.f32 %v72_v17, %v70_v15  ;;  %v112_v50 = vld [vmem:[%s1890_s0 + $0xd4] sm:$0xf] }
  0x87   :  { %v105_v58 = vadd.f32 %v103_v52, %v101_v54  ;;  %v78_v23 = vadd.f32 %v76_v21, %v74_v19  ;;  %v116_v52 = vld [vmem:[%s1890_s0 + $0xd8] sm:$0xf]  ;;  %v120_v54 = vld [vmem:[%s1890_s0 + $0xdc] sm:$0xf] }
  0x89   :  { %v109_v62 = vadd.f32 %v107_v56, %v105_v58  ;;  %v82_v27 = vadd.f32 %v80_v25, %v78_v23  ;;  %v897_v23 = vmov 0  }
  0x8a   :  { %865 = vset.pattern.permute.xlu1 %v897_v23  ;;  %866 = vset.pattern.permute.xlu2 %v897_v23 }
  0x8b   :  { %v752_v42 = vld [vmem:[#allocation4 + $0x10] sm:$0x3]  ;;  %v113_v2 = vadd.f32 %v111_v60, %v109_v62  ;;  %v86_v31 = vadd.f32 %v84_v29, %v82_v27  ;;  %v128_v60 = vld [vmem:[%s1890_s0 + $0xe4] sm:$0xf]  ;;  %v132_v62 = vld [vmem:[%s1890_s0 + $0xe8] sm:$0xf]  ;;  %867 = vset.pattern.permute.xlu0 %v897_v23 }
  0x8c   :  { %v760_v45 = vsel %vm738_vm1, %v752_v42, 0.0 }
  0x8d   :  { %761 = vadd.xlane.f32.xlu1 %v760_v45  ;;  %v117_v6 = vadd.f32 %v115_v0, %v113_v2  ;;  %v90_v35 = vadd.f32 %v88_v33, %v86_v31  ;;  %v136_v0 = vld [vmem:[%s1890_s0 + $0xec] sm:$0xf]  ;;  %v140_v2 = vld [vmem:[%s1890_s0 + $0xf0] sm:$0xf] }
  0x8f   :  { %v121_v10 = vadd.f32 %v119_v4, %v117_v6  ;;  %v94_v39 = vadd.f32 %v92_v37, %v90_v35  ;;  %v144_v4 = vld [vmem:[%s1890_s0 + $0xf4] sm:$0xf] }
  0x91   :  { %v125_v14 = vadd.f32 %v123_v8, %v121_v10  ;;  %v98_v43 = vadd.f32 %v96_v41, %v94_v39  ;;  %v148_v8 = vld [vmem:[%s1890_s0 + $0xf8] sm:$0xf]  ;;  %v152_v10 = vld [vmem:[%s1890_s0 + $0xfc] sm:$0xf]  ;;  %s898_s0 = smov [#allocation5]  }
  0x92   :  { %s851_s21 = sshll.u32 %s898_s0, 4  ;;  %s852_s21 = int_to_ptr.vmem [resolvable:$true] %s851_s21 }
  0x93   :  { %v129_v18 = vadd.f32 %v127_v12, %v125_v14  ;;  %v102_v46 = vadd.f32 %v100_v44, %v98_v43 }
  0x95   :  { %v133_v22 = vadd.f32 %v131_v16, %v129_v18  ;;  %v106_v48 = vadd.f32 %v104_v47, %v102_v46 }
  0x97   :  { %v137_v26 = vadd.f32 %v135_v20, %v133_v22  ;;  %v110_v51 = vadd.f32 %v108_v49, %v106_v48 }
  0x99   :  { %v141_v30 = vadd.f32 %v139_v24, %v137_v26  ;;  %v114_v53 = vadd.f32 %v112_v50, %v110_v51 }
  0x9b   :  { %v145_v34 = vadd.f32 %v143_v28, %v141_v30  ;;  %v118_v55 = vadd.f32 %v116_v52, %v114_v53 }
  0x9d   :  { %v149_v38 = vadd.f32 %v147_v32, %v145_v34  ;;  %v122_v59 = vadd.f32 %v120_v54, %v118_v55 }
  0x9f   :  { %v153_v42 = vadd.f32 %v151_v36, %v149_v38  ;;  %v126_v61 = vadd.f32 %v124_v57, %v122_v59 }
  0xa1   :  { %v157_v45 = vadd.f32 %v155_v40, %v153_v42  ;;  %v130_v63 = vadd.f32 %v128_v60, %v126_v61 }
  0xa3   :  { %159 = vst [vmem:[#allocation2] sm:$0xf] %v157_v45  ;;  %v134_v1 = vadd.f32 %v132_v62, %v130_v63 }
  0xa5   :  { %v138_v3 = vadd.f32 %v136_v0, %v134_v1 }
  0xa7   :  { %v142_v6 = vadd.f32 %v140_v2, %v138_v3 }
  0xa9   :  { %v146_v9 = vadd.f32 %v144_v4, %v142_v6  ;;  %v795_v4 = vlaneseq }
  0xaa   :  { %v692_v56 = vld [vmem:[#allocation2] sm:$0xf] }
  0xab   :  { %v695_v58 = vsel %vm694_vm2, %v692_v56, 0.0  ;;  %v150_v11 = vadd.f32 %v148_v8, %v146_v9  ;;  %v796_v8 = vand.u32 127, %v795_v4 }
  0xac   :  { %696 = vadd.xlane.f32.xlu2 %v695_v58 }
  0xad   :  { %v154_v14 = vadd.f32 %v152_v10, %v150_v11  ;;  %v810_v11 = vadd.s32 4294967292, %v796_v8 }
  0xaf   :  { %v158_v15 = vadd.f32 %v156_v13, %v154_v14  ;;  %v823_v14 = vadd.s32 4294967289, %v796_v8 }
  0xb1   :  { %160 = vst [vmem:[#allocation2 + $0x4] sm:$0xf] %v158_v15 }
  0xb3   :  { %v754_v28 = vpop.xlane.xlu0 %753 }
  0xb4   :  { %v763_v31 = vmul.f32 0.00024414063, %v754_v28 }
  0xb5   :  { %v710_v5 = vpop.xlane.xlu1 %709 }
  0xb6   :  { %v720_v7 = vmul.f32 0.00024414063, %v710_v5  ;;  %v767_v33 = vmul.f32 %v763_v31, %v763_v31 }
  0xb8   :  { %v724_v12 = vmul.f32 %v720_v7, %v720_v7  ;;  %v693_v25 = vld [vmem:[#allocation2 + $0x4] sm:$0xf]  ;;  %v773_v38 = vrot.slane %v767_v33, 2  ;;  %v779_v47 = vrot.slane %v767_v33, 4  ;;  %v785_v52 = vrot.slane %v767_v33, 6 }
  0xb9   :  { %v698_v27 = vsel %vm694_vm2, %v693_v25, 0.0 }
  0xba   :  { %v730_v16 = vrot.slane %v724_v12, 3  ;;  %v739_v19 = vrot.slane %v724_v12, 6  ;;  %699 = vadd.xlane.f32.xlu0 %v698_v27  ;;  %v777_v44 = vadd.f32 %v773_v38, %v767_v33 }
  0xbc   :  { %v734_v21 = vadd.f32 %v730_v16, %v724_v12  ;;  %v783_v49 = vadd.f32 %v779_v47, %v777_v44 }
  0xbe   :  { %v789_v54 = vadd.f32 %v785_v52, %v783_v49 }
  0xc8   :  { %v714_v17 = vpop.xlane.xlu2 %713 }
  0xc9   :  { %v721_v18 = vmul.f32 0.00024414063, %v714_v17 }
  0xca   :  { %v759_v34 = vpop.xlane.xlu0 %758 }
  0xcb   :  { %v725_v20 = vmul.f32 %v721_v18, %v721_v18  ;;  %v765_v39 = vmul.f32 0.00024414063, %v759_v34 }
  0xcd   :  { %v740_v22 = vrot.slane %v725_v20, 6  ;;  %v769_v45 = vmul.f32 %v765_v39, %v765_v39 }
  0xcf   :  { %v741_v24 = vsel %vm738_vm1, %v739_v19, %v740_v22  ;;  %v774_v50 = vrot.slane %v769_v45, 2  ;;  %v780_v58 = vrot.slane %v769_v45, 4  ;;  %v786_v60 = vrot.slane %v769_v45, 6 }
  0xd0   :  { %v747_v26 = vadd.f32 %v741_v24, %v734_v21 }
  0xd1   :  { %v778_v56 = vadd.f32 %v774_v50, %v769_v45 }
  0xd2   :  { %805 = vperm.xlu1 %865, %v747_v26  }
  0xd3   :  { %v784_v59 = vadd.f32 %v780_v58, %v778_v56 }
  0xd5   :  { %v716_v29 = vpop.xlane.xlu1 %715  ;;  %v790_v62 = vadd.f32 %v786_v60, %v784_v59 }
  0xd6   :  { %v722_v30 = vmul.f32 0.00024414063, %v716_v29 }
  0xd8   :  { %v726_v32 = vmul.f32 %v722_v30, %v722_v30 }
  0xda   :  { %v731_v35 = vrot.slane %v726_v32, 3  ;;  %v742_v40 = vrot.slane %v726_v32, 6 }
  0xdc   :  { %v735_v42 = vadd.f32 %v731_v35, %v726_v32 }
  0xea   :  { %v719_v36 = vpop.xlane.xlu2 %718 }
  0xeb   :  { %v723_v37 = vmul.f32 0.00024414063, %v719_v36 }
  0xed   :  { %v727_v41 = vmul.f32 %v723_v37, %v723_v37 }
  0xef   :  { %v743_v43 = vrot.slane %v727_v41, 6 }
  0xf1   :  { %v744_v46 = vsel %vm738_vm1, %v742_v40, %v743_v43 }
  0xf2   :  { %v748_v48 = vadd.f32 %v744_v46, %v735_v42 }
  0xf4   :  { %808 = vperm.xlu2 %866, %v748_v48  }
  0xf5   :  { %v757_v51 = vpop.xlane.xlu0 %756 }
  0xf6   :  { %v764_v53 = vmul.f32 0.00024414063, %v757_v51 }
  0xf8   :  { %v768_v55 = vmul.f32 %v764_v53, %v764_v53 }
  0xfa   :  { %v791_v57 = vadd.f32 %v789_v54, %v768_v55 }
  0xfc   :  { %818 = vperm.xlu0 %867, %v791_v57  }
 0x100   :  { %v762_v61 = vpop.xlane.xlu1 %761 }
 0x101   :  { %v766_v63 = vmul.f32 0.00024414063, %v762_v61 }
 0x103   :  { %v770_v0 = vmul.f32 %v766_v63, %v766_v63 }
 0x105   :  { %v792_v1 = vadd.f32 %v790_v62, %v770_v0 }
 0x107   :  { %821 = vperm.xlu2 %866, %v792_v1  }
 0x11f   :  { %v697_v2 = vpop.xlane.xlu2 %696 }
 0x120   :  { %v701_v6 = vmul.f32 0.00024414063, %v697_v2 }
 0x122   :  { %v703_v10 = vmul.f32 %v701_v6, %v701_v6 }
 0x124   :  { %v797_v15 = vperm.slane %v703_v10, %v796_v8 }
 0x12d   :  { %v700_v3 = vpop.xlane.xlu0 %699 }
 0x12e   :  { %v702_v7 = vmul.f32 0.00024414063, %v700_v3 }
 0x130   :  { %v704_v12 = vmul.f32 %v702_v7, %v702_v7 }
 0x132   :  { %v798_v18 = vperm.slane %v704_v12, %v796_v8 }
 0x134   :  { %v800_v23 = vsel %vm799_vm3, %v798_v18, %v797_v15 }
 0x144   :  { %v806_v9 = vpop.permute.xlu1 %805 }
 0x145   :  { %v811_v13 = vperm.slane %v806_v9, %v810_v11 }
 0x14e   :  { %v809_v5 = vpop.permute.xlu2 %808 }
 0x14f   :  { %v812_v16 = vperm.slane %v809_v5, %v810_v11 }
 0x151   :  { %v813_v19 = vsel %vm799_vm3, %v812_v16, %v811_v13 }
 0x152   :  { %v829_v24 = vsel %vm828_vm4, %v800_v23, %v813_v19 }
 0x161   :  { %v822_v17 = vpop.permute.xlu2 %821 }
 0x162   :  { %v825_v21 = vperm.slane %v822_v17, %v823_v14 }
 0x16e   :  { %v819_v20 = vpop.permute.xlu0 %818 }
 0x16f   :  { %v824_v22 = vperm.slane %v819_v20, %v823_v14 }
 0x171   :  { %v826_v25 = vsel %vm799_vm3, %v825_v21, %v824_v22 }
 0x172   :  { %v831_v26 = vsel %vm830_vm5, %v829_v24, %v826_v25 }
 0x173   :  { %868 = vrsqrt.f32 %v831_v26  ;;  %vm839_vm6 = vcmp.eq.f32.partialorder %v831_v26, inf  ;;  %v842_v34 = vand.u32 2147483648, %v831_v26  ;;  %vm841_vm8 = vcmp.eq.f32.partialorder %v831_v26, 0.0 }
 0x179   :  { %v869_v27 = vpop.eup %868 }
 0x17a   :  { %v833_v28 = vmul.f32 %v869_v27, %v831_v26 }
 0x17c   :  { %v834_v29 = vmul.f32 %v869_v27, %v833_v28 }
 0x17e   :  { %v835_v30 = vmul.f32 0.5, %v834_v29 }
 0x180   :  { %v836_v31 = vsub.f32 1.5, %v835_v30 }
 0x182   :  { %v837_v32 = vmul.f32 %v869_v27, %v836_v31 }
 0x184   :  { %v838_v33 = vmul.f32 %v837_v32, %v831_v26 }
 0x186   :  { %v840_v35 = vsel %vm839_vm6, %v831_v26, %v838_v33 }
 0x187   :  { %v843_v36 = vsel %vm841_vm8, %v842_v34, %v840_v35 }
 0x188   :  { %845 = vst.msk [vmem:[#allocation5] sm:$0x3] %vm844_vm7, %v843_v36 }
 0x189   :  { %856 = dma.vmem_to_hbm [thread:$0]  %s852_s21, 32, %s854_s24, [#allocation6]  }
 0x18a   :  { %894 = dma.done.wait [#allocation6], 32  }
 0x18b   :  { %895 = vsyncadd [#allocation6], 4294967264 }
 0x18c   :  { %861 = vsyncpa [#allocation6], 1 }

</bundles_post_ra>
